<compile_context>
chip_gen: v5e
topology: v5e:2x2
jax: 0.10.0
libtpu: 0.0.40
codegen_flags: <defaults>
</compile_context>

<pallas_src>
import functools

import jax
import jax.numpy as jnp
from jax import lax
from jax.experimental import pallas as pl
from jax.experimental.pallas import tpu as pltpu


def _lstm_cell(gates, c, n):
    """PyTorch-order (i,f,g,o) LSTM pointwise math.

    Full-slab sigmoid (one EUP pass over 4n lanes); tanh only on the g slice.
    """
    sig = jax.nn.sigmoid(gates)                       # (B, 4n)
    g = jnp.tanh(gates[:, 2 * n:3 * n])               # (B, n)  -- g gate only
    c_new = sig[:, n:2 * n] * c + sig[:, 0:n] * g
    h_new = sig[:, 3 * n:4 * n] * jnp.tanh(c_new)
    return h_new, c_new


def _fused_lstm_kernel(x_ref, wih1_ref, b1_ref, wcomb_ref, b2_ref,
                       out_ref,
                       xw1_scr, h1c, c1c, h2c, c2c,
                       *, t_blk, batch, hidden, out_dim, single_block):
    """One grid step == one block of `t_blk` timesteps through BOTH layers."""
    B, H, O = batch, hidden, out_dim
    G1 = 4 * H

    # ---- layer-1 input projection, time-parallel (one big MXU matmul) ----
    proj = (jnp.dot(x_ref[...], wih1_ref[...],
                    preferred_element_type=jnp.float32) + b1_ref[...])
    # Re-tile into (t_blk, B, 4H) so the serial loop reads whole aligned tiles
    # instead of masked sub-(8,128) slices. Off the critical path (perf #3).
    for k in range(t_blk):
        xw1_scr[k] = proj[k * B:(k + 1) * B, :]

    wcomb = wcomb_ref[...]       # (H+O, 4H+4O) bf16, hoisted out of the loop
    b2 = b2_ref[...]             # (1, 4O) f32

    # TODO(synk): holding wcomb in MXU staging regs (pltpu.matmul_push_rhs /
    #             matmul_acc_lhs / matmul_pop) left to the compiler; the loop
    #             already reuses a single RHS every step.

    # ---- wavefront prologue: layer-1 step 0 of this block ----
    if single_block:
        # carries are statically zero -> no recurrent matmul needed.
        h1, c1 = _lstm_cell(xw1_scr[0], jnp.zeros((B, H), jnp.float32), H)
        h2 = jnp.zeros((B, O), jnp.float32)
        c2 = jnp.zeros((B, O), jnp.float32)
    else:
        @pl.when(pl.program_id(0) == 0)
        def _():
            h1c[...] = jnp.zeros_like(h1c)
            c1c[...] = jnp.zeros_like(c1c)
            h2c[...] = jnp.zeros_like(h2c)
            c2c[...] = jnp.zeros_like(c2c)

        h1 = h1c[...]
        c1 = c1c[...]
        h2 = h2c[...]
        c2 = c2c[...]
        lhs = jnp.concatenate([h1, h2], axis=1).astype(jnp.bfloat16)
        comb = jnp.dot(lhs, wcomb, preferred_element_type=jnp.float32)
        h1, c1 = _lstm_cell(comb[:, :G1] + xw1_scr[0], c1, H)

    # ---- fused wavefront loop: iteration k = layer-1 step k + layer-2 step
    #      k-1, ONE block-diagonal matmul per iteration (perf #1) ----
    def fused_step(k, carry):
        h1, c1, h2, c2 = carry
        lhs = jnp.concatenate([h1, h2], axis=1).astype(jnp.bfloat16)  # (B,H+O)
        comb = jnp.dot(lhs, wcomb,
                       preferred_element_type=jnp.float32)            # (B,4H+4O)
        # layer-2 step k-1: input h1_{k-1} (via Wih2) + recurrent h2_{k-2}
        h2n, c2n = _lstm_cell(comb[:, G1:] + b2, c2, O)
        out_ref[k - 1] = h2n.astype(out_ref.dtype)                    # aligned tile
        # layer-1 step k
        h1n, c1n = _lstm_cell(comb[:, :G1] + xw1_scr[k], c1, H)
        return (h1n, c1n, h2n, c2n)

    unroll = True if t_blk <= 32 else 8        # perf #8: cap unroll when long
    h1, c1, h2, c2 = lax.fori_loop(1, t_blk, fused_step, (h1, c1, h2, c2),
                                   unroll=unroll)

    # ---- wavefront epilogue: layer-2 step t_blk-1 ----
    lhs = jnp.concatenate([h1, h2], axis=1).astype(jnp.bfloat16)
    comb = jnp.dot(lhs, wcomb, preferred_element_type=jnp.float32)
    h2, c2 = _lstm_cell(comb[:, G1:] + b2, c2, O)
    out_ref[t_blk - 1] = h2.astype(out_ref.dtype)

    if not single_block:
        h1c[...] = h1
        c1c[...] = c1
        h2c[...] = h2
        c2c[...] = c2


def _vmem_budget_bytes():
    """Per-core VMEM capacity; conservative v7x fallback (perf #6)."""
    try:
        info = pltpu.get_tpu_info()
        cap = getattr(info, "vmem_capacity_bytes", None)
        if cap:
            return int(cap)
    except Exception:
        pass
    return 64 * 1024 * 1024


def fused_lstm_pallas(x, p1, p2, *, t_blk=None):
    """Two stacked single-layer LSTMs (PyTorch gate order i,f,g,o), zero init.

    x: (S, B, D) f32.  p*: dicts with w_ih (4H, D_in), w_hh (4H, H), b_ih, b_hh.
    returns (S, B, O) f32.
    """
    S, B, D = x.shape
    H = p1['w_hh'].shape[1]
    O = p2['w_hh'].shape[1]
    f32, bf16 = jnp.float32, jnp.bfloat16

    # ---- choose time-block size under the per-chip VMEM budget (perf #6) ----
    budget = _vmem_budget_bytes()

    def block_bytes(tb):
        pad_r = lambda r: -(-r // 8) * 8
        pad_c = lambda c: -(-c // 128) * 128
        xw1 = tb * pad_r(B) * pad_c(4 * H) * 4
        xin = 2 * pad_r(tb * B) * pad_c(D) * 2               # double-buffered bf16
        out = 2 * tb * pad_r(B) * pad_c(O) * 4
        wts = (pad_r(D) * pad_c(4 * H) + pad_r(H + O) * pad_c(4 * (H + O))) * 2
        return xw1 + xin + out + wts + (1 << 16)

    if t_blk is None:
        t_blk = S
        for cand in range(S, 0, -1):
            if S % cand:
                continue
            ok_align = (cand == S) or ((cand * B) % 8 == 0)
            if ok_align and cand <= 64 and block_bytes(cand) <= budget // 4:
                t_blk = cand
                break
    assert S % t_blk == 0
    nb = S // t_blk
    assert nb == 1 or (t_blk * B) % 8 == 0, "multi-block needs 8-row alignment"

    # ---- pack operands: bf16 MXU inputs, f32 folded biases ----
    x2d = x.reshape(S * B, D).astype(bf16)
    wih1 = jnp.asarray(p1['w_ih'].T, bf16)                       # (D, 4H)
    b1 = (p1['b_ih'] + p1['b_hh']).reshape(1, 4 * H).astype(f32)
    b2 = (p2['b_ih'] + p2['b_hh']).reshape(1, 4 * O).astype(f32)
    # Block-diagonal wavefront weight (perf #1):
    #   [h1_{k-1} | h2_{k-2}] @ [[Whh1^T  Wih2^T], [0  Whh2^T]]
    whh1 = jnp.asarray(p1['w_hh'].T, f32)                        # (H, 4H)
    wih2 = jnp.asarray(p2['w_ih'].T, f32)                        # (H, 4O)
    whh2 = jnp.asarray(p2['w_hh'].T, f32)                        # (O, 4O)
    wcomb = jnp.concatenate(
        [jnp.concatenate([whh1, wih2], axis=1),
         jnp.concatenate([jnp.zeros((O, 4 * H), f32), whh2], axis=1)],
        axis=0).astype(bf16)                                     # (H+O, 4(H+O))

    kernel = functools.partial(_fused_lstm_kernel, t_blk=t_blk, batch=B,
                               hidden=H, out_dim=O, single_block=(nb == 1))

    est = block_bytes(t_blk)
    vmem_limit = int(max(32 * 1024 * 1024, min(3 * budget // 4, 4 * est)))

    out = pl.pallas_call(
        kernel,
        out_shape=jax.ShapeDtypeStruct((S, B, O), jnp.float32),
        grid_spec=pltpu.PrefetchScalarGridSpec(
            num_scalar_prefetch=0,
            grid=(nb,),
            in_specs=[
                pl.BlockSpec((t_blk * B, D), lambda i: (i, 0)),        # x block
                pl.BlockSpec((D, 4 * H), lambda i: (0, 0)),            # Wih1^T
                pl.BlockSpec((1, 4 * H), lambda i: (0, 0)),            # bias1
                pl.BlockSpec((H + O, 4 * (H + O)), lambda i: (0, 0)),  # wcomb
                pl.BlockSpec((1, 4 * O), lambda i: (0, 0)),            # bias2
            ],
            out_specs=pl.BlockSpec((t_blk, B, O), lambda i: (i, 0, 0)),
            scratch_shapes=[
                pltpu.VMEM((t_blk, B, 4 * H), jnp.float32),  # xw1, 3D aligned
                pltpu.VMEM((B, H), jnp.float32),             # h1 carry
                pltpu.VMEM((B, H), jnp.float32),             # c1 carry
                pltpu.VMEM((B, O), jnp.float32),             # h2 carry
                pltpu.VMEM((B, O), jnp.float32),             # c2 carry
            ],
        ),
        compiler_params=pltpu.CompilerParams(
            dimension_semantics=("arbitrary",),       # serial time carry
            vmem_limit_bytes=vmem_limit),
    )(x2d, wih1, b1, wcomb, b2)
    return out


# ----------------------- pure-JAX reference (for checking) ------------------
def lstm_layer_ref(x, w_ih, w_hh, b_ih, b_hh, h0, c0, *, mxu_dtype=jnp.float32):
    """Matches the kernel's numerics when mxu_dtype=bfloat16 (f32 accumulate)."""
    H = w_hh.shape[1]
    wih = w_ih.astype(mxu_dtype).astype(jnp.float32)
    whh = w_hh.astype(mxu_dtype).astype(jnp.float32)
    bias = (b_ih + b_hh).astype(jnp.float32)

    def step(carry, x_t):
        h, c = carry
        xb = x_t.astype(mxu_dtype).astype(jnp.float32)
        hb = h.astype(mxu_dtype).astype(jnp.float32)
        gates = xb @ wih.T + hb @ whh.T + bias
        i = jax.nn.sigmoid(gates[:, 0 * H:1 * H])
        f = jax.nn.sigmoid(gates[:, 1 * H:2 * H])
        g = jnp.tanh(gates[:, 2 * H:3 * H])
        o = jax.nn.sigmoid(gates[:, 3 * H:4 * H])
        c_new = f * c + i * g
        h_new = o * jnp.tanh(c_new)
        return (h_new, c_new), h_new

    _, out = jax.lax.scan(step, (h0, c0), x)
    return out


# ----------------------------- model wrapper --------------------------------
def init_lstm_params(key, input_dim, hidden_dim):
    """PyTorch nn.LSTM init: U(-1/sqrt(H), 1/sqrt(H)) for all params."""
    k = 1.0 / jnp.sqrt(hidden_dim)
    ks = jax.random.split(key, 4)
    return dict(
        w_ih=jax.random.uniform(ks[0], (4 * hidden_dim, input_dim), jnp.float32, -k, k),
        w_hh=jax.random.uniform(ks[1], (4 * hidden_dim, hidden_dim), jnp.float32, -k, k),
        b_ih=jax.random.uniform(ks[2], (4 * hidden_dim,), jnp.float32, -k, k),
        b_hh=jax.random.uniform(ks[3], (4 * hidden_dim,), jnp.float32, -k, k),
    )


def baseline_lstm_forward(sequence, params, config):
    """sequence: (seq_len, batch, input_dim), time-major. Single fused kernel."""
    del config  # hidden/output dims come from the weight shapes
    return fused_lstm_pallas(sequence, params['lstm'], params['fc'])


def baseline_lstm_forward_ref(sequence, params, config):
    B = sequence.shape[1]
    H = config['hidden_dim']
    O = config['output_dim']
    h0 = jnp.zeros((B, H), jnp.float32)
    c0 = jnp.zeros((B, H), jnp.float32)
    out = lstm_layer_ref(sequence, params['lstm']['w_ih'], params['lstm']['w_hh'],
                         params['lstm']['b_ih'], params['lstm']['b_hh'], h0, c0,
                         mxu_dtype=jnp.bfloat16)
    h0f = jnp.zeros((B, O), jnp.float32)
    c0f = jnp.zeros((B, O), jnp.float32)
    out = lstm_layer_ref(out, params['fc']['w_ih'], params['fc']['w_hh'],
                         params['fc']['b_ih'], params['fc']['b_hh'], h0f, c0f,
                         mxu_dtype=jnp.bfloat16)
    return out


if __name__ == "__main__":
    config = dict(input_dim=16, hidden_dim=32, output_dim=16,
                  batch_size=2, layers=1, cuda=False)
    seq_len = 8

    key = jax.random.PRNGKey(0)
    k_x, k_l1, k_l2 = jax.random.split(key, 3)

    params = dict(
        lstm=init_lstm_params(k_l1, config['input_dim'], config['hidden_dim']),
        fc=init_lstm_params(k_l2, config['hidden_dim'], config['output_dim']),
    )

    # time-major input: (seq_len, batch, input_dim)
    x = jax.random.normal(k_x, (seq_len, config['batch_size'], config['input_dim']),
                          jnp.float32)

    out = baseline_lstm_forward(x, params, config)
    out = jax.block_until_ready(out)

    ref = baseline_lstm_forward_ref(x, params, config)
    assert out.shape == (seq_len, config['batch_size'], config['output_dim'])
    assert jnp.allclose(out, ref, atol=1e-2, rtol=1e-2), "mismatch vs JAX reference"

    print("KERNEL_OK")
</pallas_src>

<mosaic_0001>
module attributes {stable_mosaic.version = 11 : i64} {
  func.func @_fused_lstm_kernel(%arg0: i32, %arg1: memref<16x16xbf16, #tpu.memory_space<vmem>>, %arg2: memref<16x128xbf16, #tpu.memory_space<vmem>>, %arg3: memref<1x128xf32, #tpu.memory_space<vmem>>, %arg4: memref<48x192xbf16, #tpu.memory_space<vmem>>, %arg5: memref<1x64xf32, #tpu.memory_space<vmem>>, %arg6: memref<8x2x16xf32, #tpu.memory_space<vmem>>, %arg7: memref<8x2x128xf32, #tpu.memory_space<vmem>>, %arg8: memref<2x32xf32, #tpu.memory_space<vmem>>, %arg9: memref<2x32xf32, #tpu.memory_space<vmem>>, %arg10: memref<2x16xf32, #tpu.memory_space<vmem>>, %arg11: memref<2x16xf32, #tpu.memory_space<vmem>>) attributes {dimension_semantics = [#tpu.dimension_semantics<arbitrary>], iteration_bounds = array<i64: 1>, scalar_prefetch = 0 : i64, scratch_operands = 5 : i64, tpu.core_type = #tpu.core_type<tc>, window_params = [{transform_indices = @transform_0, window_bounds = array<i64: 16, 16>}, {pipeline_mode = #tpu.pipeline_mode<synchronous>, transform_indices = @transform_1, window_bounds = array<i64: 16, 128>}, {pipeline_mode = #tpu.pipeline_mode<synchronous>, transform_indices = @transform_2, window_bounds = array<i64: 1, 128>}, {pipeline_mode = #tpu.pipeline_mode<synchronous>, transform_indices = @transform_3, window_bounds = array<i64: 48, 192>}, {pipeline_mode = #tpu.pipeline_mode<synchronous>, transform_indices = @transform_4, window_bounds = array<i64: 1, 64>}, {transform_indices = @transform_5, window_bounds = array<i64: 8, 2, 16>}]} {
    %c0 = arith.constant 0 : index
    %c0_0 = arith.constant 0 : index
    %0 = vector.load %arg1[%c0, %c0_0] : memref<16x16xbf16, #tpu.memory_space<vmem>>, vector<16x16xbf16>
    %c0_1 = arith.constant 0 : index
    %c0_2 = arith.constant 0 : index
    %1 = vector.load %arg2[%c0_1, %c0_2] : memref<16x128xbf16, #tpu.memory_space<vmem>>, vector<16x128xbf16>
    %cst = arith.constant dense<0.000000e+00> : vector<16x128xf32>
    %2 = tpu.matmul %0, %1, %cst {dimension_numbers = #tpu.dot_dimension_numbers<[1], [0], [0], [1], [0, 0, 1, 1], [], []>} : vector<16x16xbf16>, vector<16x128xbf16>, vector<16x128xf32> -> vector<16x128xf32>
    %c0_3 = arith.constant 0 : index
    %c0_4 = arith.constant 0 : index
    %3 = vector.load %arg3[%c0_3, %c0_4] : memref<1x128xf32, #tpu.memory_space<vmem>>, vector<1x128xf32>
    %4 = vector.broadcast %3 : vector<1x128xf32> to vector<16x128xf32>
    %5 = arith.addf %2, %4 : vector<16x128xf32>
    %6 = vector.extract_strided_slice %5 {offsets = [0, 0], sizes = [2, 128], strides = [1, 1]} : vector<16x128xf32> to vector<2x128xf32>
    %c0_5 = arith.constant 0 : index
    %c0_6 = arith.constant 0 : index
    %c0_7 = arith.constant 0 : index
    %7 = vector.load %arg7[%c0_5, %c0_6, %c0_7] : memref<8x2x128xf32, #tpu.memory_space<vmem>>, vector<1x2x128xf32>
    %8 = vector.shape_cast %7 : vector<1x2x128xf32> to vector<2x128xf32>
    %9 = vector.shape_cast %6 : vector<2x128xf32> to vector<1x2x128xf32>
    tpu.vector_store %arg7[%c0_5, %c0_6, %c0_7], %9 {strides = array<i32>} : memref<8x2x128xf32, #tpu.memory_space<vmem>>, vector<1x2x128xf32>,
    %10 = vector.extract_strided_slice %5 {offsets = [2, 0], sizes = [2, 128], strides = [1, 1]} : vector<16x128xf32> to vector<2x128xf32>
    %c1 = arith.constant 1 : index
    %c0_8 = arith.constant 0 : index
    %c0_9 = arith.constant 0 : index
    %11 = vector.load %arg7[%c1, %c0_8, %c0_9] : memref<8x2x128xf32, #tpu.memory_space<vmem>>, vector<1x2x128xf32>
    %12 = vector.shape_cast %11 : vector<1x2x128xf32> to vector<2x128xf32>
    %13 = vector.shape_cast %10 : vector<2x128xf32> to vector<1x2x128xf32>
    tpu.vector_store %arg7[%c1, %c0_8, %c0_9], %13 {strides = array<i32>} : memref<8x2x128xf32, #tpu.memory_space<vmem>>, vector<1x2x128xf32>,
    %14 = vector.extract_strided_slice %5 {offsets = [4, 0], sizes = [2, 128], strides = [1, 1]} : vector<16x128xf32> to vector<2x128xf32>
    %c2 = arith.constant 2 : index
    %c0_10 = arith.constant 0 : index
    %c0_11 = arith.constant 0 : index
    %15 = vector.load %arg7[%c2, %c0_10, %c0_11] : memref<8x2x128xf32, #tpu.memory_space<vmem>>, vector<1x2x128xf32>
    %16 = vector.shape_cast %15 : vector<1x2x128xf32> to vector<2x128xf32>
    %17 = vector.shape_cast %14 : vector<2x128xf32> to vector<1x2x128xf32>
    tpu.vector_store %arg7[%c2, %c0_10, %c0_11], %17 {strides = array<i32>} : memref<8x2x128xf32, #tpu.memory_space<vmem>>, vector<1x2x128xf32>,
    %18 = vector.extract_strided_slice %5 {offsets = [6, 0], sizes = [2, 128], strides = [1, 1]} : vector<16x128xf32> to vector<2x128xf32>
    %c3 = arith.constant 3 : index
    %c0_12 = arith.constant 0 : index
    %c0_13 = arith.constant 0 : index
    %19 = vector.load %arg7[%c3, %c0_12, %c0_13] : memref<8x2x128xf32, #tpu.memory_space<vmem>>, vector<1x2x128xf32>
    %20 = vector.shape_cast %19 : vector<1x2x128xf32> to vector<2x128xf32>
    %21 = vector.shape_cast %18 : vector<2x128xf32> to vector<1x2x128xf32>
    tpu.vector_store %arg7[%c3, %c0_12, %c0_13], %21 {strides = array<i32>} : memref<8x2x128xf32, #tpu.memory_space<vmem>>, vector<1x2x128xf32>,
    %22 = vector.extract_strided_slice %5 {offsets = [8, 0], sizes = [2, 128], strides = [1, 1]} : vector<16x128xf32> to vector<2x128xf32>
    %c4 = arith.constant 4 : index
    %c0_14 = arith.constant 0 : index
    %c0_15 = arith.constant 0 : index
    %23 = vector.load %arg7[%c4, %c0_14, %c0_15] : memref<8x2x128xf32, #tpu.memory_space<vmem>>, vector<1x2x128xf32>
    %24 = vector.shape_cast %23 : vector<1x2x128xf32> to vector<2x128xf32>
    %25 = vector.shape_cast %22 : vector<2x128xf32> to vector<1x2x128xf32>
    tpu.vector_store %arg7[%c4, %c0_14, %c0_15], %25 {strides = array<i32>} : memref<8x2x128xf32, #tpu.memory_space<vmem>>, vector<1x2x128xf32>,
    %26 = vector.extract_strided_slice %5 {offsets = [10, 0], sizes = [2, 128], strides = [1, 1]} : vector<16x128xf32> to vector<2x128xf32>
    %c5 = arith.constant 5 : index
    %c0_16 = arith.constant 0 : index
    %c0_17 = arith.constant 0 : index
    %27 = vector.load %arg7[%c5, %c0_16, %c0_17] : memref<8x2x128xf32, #tpu.memory_space<vmem>>, vector<1x2x128xf32>
    %28 = vector.shape_cast %27 : vector<1x2x128xf32> to vector<2x128xf32>
    %29 = vector.shape_cast %26 : vector<2x128xf32> to vector<1x2x128xf32>
    tpu.vector_store %arg7[%c5, %c0_16, %c0_17], %29 {strides = array<i32>} : memref<8x2x128xf32, #tpu.memory_space<vmem>>, vector<1x2x128xf32>,
    %30 = vector.extract_strided_slice %5 {offsets = [12, 0], sizes = [2, 128], strides = [1, 1]} : vector<16x128xf32> to vector<2x128xf32>
    %c6 = arith.constant 6 : index
    %c0_18 = arith.constant 0 : index
    %c0_19 = arith.constant 0 : index
    %31 = vector.load %arg7[%c6, %c0_18, %c0_19] : memref<8x2x128xf32, #tpu.memory_space<vmem>>, vector<1x2x128xf32>
    %32 = vector.shape_cast %31 : vector<1x2x128xf32> to vector<2x128xf32>
    %33 = vector.shape_cast %30 : vector<2x128xf32> to vector<1x2x128xf32>
    tpu.vector_store %arg7[%c6, %c0_18, %c0_19], %33 {strides = array<i32>} : memref<8x2x128xf32, #tpu.memory_space<vmem>>, vector<1x2x128xf32>,
    %34 = vector.extract_strided_slice %5 {offsets = [14, 0], sizes = [2, 128], strides = [1, 1]} : vector<16x128xf32> to vector<2x128xf32>
    %c7 = arith.constant 7 : index
    %c0_20 = arith.constant 0 : index
    %c0_21 = arith.constant 0 : index
    %35 = vector.load %arg7[%c7, %c0_20, %c0_21] : memref<8x2x128xf32, #tpu.memory_space<vmem>>, vector<1x2x128xf32>
    %36 = vector.shape_cast %35 : vector<1x2x128xf32> to vector<2x128xf32>
    %37 = vector.shape_cast %34 : vector<2x128xf32> to vector<1x2x128xf32>
    tpu.vector_store %arg7[%c7, %c0_20, %c0_21], %37 {strides = array<i32>} : memref<8x2x128xf32, #tpu.memory_space<vmem>>, vector<1x2x128xf32>,
    %c0_22 = arith.constant 0 : index
    %c0_23 = arith.constant 0 : index
    %38 = vector.load %arg4[%c0_22, %c0_23] : memref<48x192xbf16, #tpu.memory_space<vmem>>, vector<48x192xbf16>
    %c0_24 = arith.constant 0 : index
    %c0_25 = arith.constant 0 : index
    %39 = vector.load %arg5[%c0_24, %c0_25] : memref<1x64xf32, #tpu.memory_space<vmem>>, vector<1x64xf32>
    %c0_26 = arith.constant 0 : index
    %c0_27 = arith.constant 0 : index
    %c0_28 = arith.constant 0 : index
    %40 = vector.load %arg7[%c0_26, %c0_27, %c0_28] : memref<8x2x128xf32, #tpu.memory_space<vmem>>, vector<1x2x128xf32>
    %41 = vector.shape_cast %40 : vector<1x2x128xf32> to vector<2x128xf32>
    %cst_29 = arith.constant 0.000000e+00 : f32
    %42 = vector.broadcast %cst_29 : f32 to vector<2x32xf32>
    %43 = arith.negf %41 : vector<2x128xf32>
    %44 = math.exp %43 : vector<2x128xf32>
    %cst_30 = arith.constant 1.000000e+00 : f32
    %45 = vector.broadcast %cst_30 : f32 to vector<2x128xf32>
    %46 = arith.addf %45, %44 : vector<2x128xf32>
    %47 = arith.divf %45, %46 : vector<2x128xf32>
    %48 = vector.extract_strided_slice %41 {offsets = [0, 64], sizes = [2, 32], strides = [1, 1]} : vector<2x128xf32> to vector<2x32xf32>
    %49 = math.tanh %48 : vector<2x32xf32>
    %50 = vector.extract_strided_slice %47 {offsets = [0, 32], sizes = [2, 32], strides = [1, 1]} : vector<2x128xf32> to vector<2x32xf32>
    %51 = arith.mulf %50, %42 : vector<2x32xf32>
    %52 = vector.extract_strided_slice %47 {offsets = [0, 0], sizes = [2, 32], strides = [1, 1]} : vector<2x128xf32> to vector<2x32xf32>
    %53 = arith.mulf %52, %49 : vector<2x32xf32>
    %54 = arith.addf %51, %53 : vector<2x32xf32>
    %55 = vector.extract_strided_slice %47 {offsets = [0, 96], sizes = [2, 32], strides = [1, 1]} : vector<2x128xf32> to vector<2x32xf32>
    %56 = math.tanh %54 : vector<2x32xf32>
    %57 = arith.mulf %55, %56 : vector<2x32xf32>
    %cst_31 = arith.constant 0.000000e+00 : f32
    %58 = vector.broadcast %cst_31 : f32 to vector<2x16xf32>
    %cst_32 = arith.constant 0.000000e+00 : f32
    %59 = vector.broadcast %cst_32 : f32 to vector<2x16xf32>
    %c1_i32 = arith.constant 1 : i32
    %60 = tpu.concatenate %57, %58 in 1 : vector<2x32xf32>, vector<2x16xf32> -> vector<2x48xf32>
    %61 = arith.truncf %60 : vector<2x48xf32> to vector<2x48xbf16>
    %cst_33 = arith.constant dense<0.000000e+00> : vector<2x192xf32>
    %62 = tpu.matmul %61, %38, %cst_33 {dimension_numbers = #tpu.dot_dimension_numbers<[1], [0], [0], [1], [0, 0, 1, 1], [], []>} : vector<2x48xbf16>, vector<48x192xbf16>, vector<2x192xf32> -> vector<2x192xf32>
    %63 = vector.extract_strided_slice %62 {offsets = [0, 128], sizes = [2, 64], strides = [1, 1]} : vector<2x192xf32> to vector<2x64xf32>
    %64 = vector.broadcast %39 : vector<1x64xf32> to vector<2x64xf32>
    %65 = arith.addf %63, %64 : vector<2x64xf32>
    %66 = arith.negf %65 : vector<2x64xf32>
    %67 = math.exp %66 : vector<2x64xf32>
    %cst_34 = arith.constant 1.000000e+00 : f32
    %68 = vector.broadcast %cst_34 : f32 to vector<2x64xf32>
    %69 = arith.addf %68, %67 : vector<2x64xf32>
    %70 = arith.divf %68, %69 : vector<2x64xf32>
    %71 = vector.extract_strided_slice %65 {offsets = [0, 32], sizes = [2, 16], strides = [1, 1]} : vector<2x64xf32> to vector<2x16xf32>
    %72 = math.tanh %71 : vector<2x16xf32>
    %73 = vector.extract_strided_slice %70 {offsets = [0, 16], sizes = [2, 16], strides = [1, 1]} : vector<2x64xf32> to vector<2x16xf32>
    %74 = arith.mulf %73, %59 : vector<2x16xf32>
    %75 = vector.extract_strided_slice %70 {offsets = [0, 0], sizes = [2, 16], strides = [1, 1]} : vector<2x64xf32> to vector<2x16xf32>
    %76 = arith.mulf %75, %72 : vector<2x16xf32>
    %77 = arith.addf %74, %76 : vector<2x16xf32>
    %78 = vector.extract_strided_slice %70 {offsets = [0, 48], sizes = [2, 16], strides = [1, 1]} : vector<2x64xf32> to vector<2x16xf32>
    %79 = math.tanh %77 : vector<2x16xf32>
    %80 = arith.mulf %78, %79 : vector<2x16xf32>
    %c1_i32_35 = arith.constant 1 : i32
    %81 = arith.subi %c1_i32, %c1_i32_35 : i32
    %82 = arith.index_cast %81 : i32 to index
    %c0_36 = arith.constant 0 : index
    %c0_37 = arith.constant 0 : index
    %83 = vector.load %arg6[%82, %c0_36, %c0_37] : memref<8x2x16xf32, #tpu.memory_space<vmem>>, vector<1x2x16xf32>
    %84 = vector.shape_cast %83 : vector<1x2x16xf32> to vector<2x16xf32>
    %85 = vector.shape_cast %80 : vector<2x16xf32> to vector<1x2x16xf32>
    tpu.vector_store %arg6[%82, %c0_36, %c0_37], %85 {strides = array<i32>} : memref<8x2x16xf32, #tpu.memory_space<vmem>>, vector<1x2x16xf32>,
    %86 = vector.extract_strided_slice %62 {offsets = [0, 0], sizes = [2, 128], strides = [1, 1]} : vector<2x192xf32> to vector<2x128xf32>
    %87 = arith.index_cast %c1_i32 : i32 to index
    %c0_38 = arith.constant 0 : index
    %c0_39 = arith.constant 0 : index
    %88 = vector.load %arg7[%87, %c0_38, %c0_39] : memref<8x2x128xf32, #tpu.memory_space<vmem>>, vector<1x2x128xf32>
    %89 = vector.shape_cast %88 : vector<1x2x128xf32> to vector<2x128xf32>
    %90 = arith.addf %86, %89 : vector<2x128xf32>
    %91 = arith.negf %90 : vector<2x128xf32>
    %92 = math.exp %91 : vector<2x128xf32>
    %cst_40 = arith.constant 1.000000e+00 : f32
    %93 = vector.broadcast %cst_40 : f32 to vector<2x128xf32>
    %94 = arith.addf %93, %92 : vector<2x128xf32>
    %95 = arith.divf %93, %94 : vector<2x128xf32>
    %96 = vector.extract_strided_slice %90 {offsets = [0, 64], sizes = [2, 32], strides = [1, 1]} : vector<2x128xf32> to vector<2x32xf32>
    %97 = math.tanh %96 : vector<2x32xf32>
    %98 = vector.extract_strided_slice %95 {offsets = [0, 32], sizes = [2, 32], strides = [1, 1]} : vector<2x128xf32> to vector<2x32xf32>
    %99 = arith.mulf %98, %54 : vector<2x32xf32>
    %100 = vector.extract_strided_slice %95 {offsets = [0, 0], sizes = [2, 32], strides = [1, 1]} : vector<2x128xf32> to vector<2x32xf32>
    %101 = arith.mulf %100, %97 : vector<2x32xf32>
    %102 = arith.addf %99, %101 : vector<2x32xf32>
    %103 = vector.extract_strided_slice %95 {offsets = [0, 96], sizes = [2, 32], strides = [1, 1]} : vector<2x128xf32> to vector<2x32xf32>
    %104 = math.tanh %102 : vector<2x32xf32>
    %105 = arith.mulf %103, %104 : vector<2x32xf32>
    %c2_i32 = arith.constant 2 : i32
    %106 = tpu.concatenate %105, %80 in 1 : vector<2x32xf32>, vector<2x16xf32> -> vector<2x48xf32>
    %107 = arith.truncf %106 : vector<2x48xf32> to vector<2x48xbf16>
    %cst_41 = arith.constant dense<0.000000e+00> : vector<2x192xf32>
    %108 = tpu.matmul %107, %38, %cst_41 {dimension_numbers = #tpu.dot_dimension_numbers<[1], [0], [0], [1], [0, 0, 1, 1], [], []>} : vector<2x48xbf16>, vector<48x192xbf16>, vector<2x192xf32> -> vector<2x192xf32>
    %109 = vector.extract_strided_slice %108 {offsets = [0, 128], sizes = [2, 64], strides = [1, 1]} : vector<2x192xf32> to vector<2x64xf32>
    %110 = vector.broadcast %39 : vector<1x64xf32> to vector<2x64xf32>
    %111 = arith.addf %109, %110 : vector<2x64xf32>
    %112 = arith.negf %111 : vector<2x64xf32>
    %113 = math.exp %112 : vector<2x64xf32>
    %cst_42 = arith.constant 1.000000e+00 : f32
    %114 = vector.broadcast %cst_42 : f32 to vector<2x64xf32>
    %115 = arith.addf %114, %113 : vector<2x64xf32>
    %116 = arith.divf %114, %115 : vector<2x64xf32>
    %117 = vector.extract_strided_slice %111 {offsets = [0, 32], sizes = [2, 16], strides = [1, 1]} : vector<2x64xf32> to vector<2x16xf32>
    %118 = math.tanh %117 : vector<2x16xf32>
    %119 = vector.extract_strided_slice %116 {offsets = [0, 16], sizes = [2, 16], strides = [1, 1]} : vector<2x64xf32> to vector<2x16xf32>
    %120 = arith.mulf %119, %77 : vector<2x16xf32>
    %121 = vector.extract_strided_slice %116 {offsets = [0, 0], sizes = [2, 16], strides = [1, 1]} : vector<2x64xf32> to vector<2x16xf32>
    %122 = arith.mulf %121, %118 : vector<2x16xf32>
    %123 = arith.addf %120, %122 : vector<2x16xf32>
    %124 = vector.extract_strided_slice %116 {offsets = [0, 48], sizes = [2, 16], strides = [1, 1]} : vector<2x64xf32> to vector<2x16xf32>
    %125 = math.tanh %123 : vector<2x16xf32>
    %126 = arith.mulf %124, %125 : vector<2x16xf32>
    %c1_i32_43 = arith.constant 1 : i32
    %127 = arith.subi %c2_i32, %c1_i32_43 : i32
    %128 = arith.index_cast %127 : i32 to index
    %c0_44 = arith.constant 0 : index
    %c0_45 = arith.constant 0 : index
    %129 = vector.load %arg6[%128, %c0_44, %c0_45] : memref<8x2x16xf32, #tpu.memory_space<vmem>>, vector<1x2x16xf32>
    %130 = vector.shape_cast %129 : vector<1x2x16xf32> to vector<2x16xf32>
    %131 = vector.shape_cast %126 : vector<2x16xf32> to vector<1x2x16xf32>
    tpu.vector_store %arg6[%128, %c0_44, %c0_45], %131 {strides = array<i32>} : memref<8x2x16xf32, #tpu.memory_space<vmem>>, vector<1x2x16xf32>,
    %132 = vector.extract_strided_slice %108 {offsets = [0, 0], sizes = [2, 128], strides = [1, 1]} : vector<2x192xf32> to vector<2x128xf32>
    %133 = arith.index_cast %c2_i32 : i32 to index
    %c0_46 = arith.constant 0 : index
    %c0_47 = arith.constant 0 : index
    %134 = vector.load %arg7[%133, %c0_46, %c0_47] : memref<8x2x128xf32, #tpu.memory_space<vmem>>, vector<1x2x128xf32>
    %135 = vector.shape_cast %134 : vector<1x2x128xf32> to vector<2x128xf32>
    %136 = arith.addf %132, %135 : vector<2x128xf32>
    %137 = arith.negf %136 : vector<2x128xf32>
    %138 = math.exp %137 : vector<2x128xf32>
    %cst_48 = arith.constant 1.000000e+00 : f32
    %139 = vector.broadcast %cst_48 : f32 to vector<2x128xf32>
    %140 = arith.addf %139, %138 : vector<2x128xf32>
    %141 = arith.divf %139, %140 : vector<2x128xf32>
    %142 = vector.extract_strided_slice %136 {offsets = [0, 64], sizes = [2, 32], strides = [1, 1]} : vector<2x128xf32> to vector<2x32xf32>
    %143 = math.tanh %142 : vector<2x32xf32>
    %144 = vector.extract_strided_slice %141 {offsets = [0, 32], sizes = [2, 32], strides = [1, 1]} : vector<2x128xf32> to vector<2x32xf32>
    %145 = arith.mulf %144, %102 : vector<2x32xf32>
    %146 = vector.extract_strided_slice %141 {offsets = [0, 0], sizes = [2, 32], strides = [1, 1]} : vector<2x128xf32> to vector<2x32xf32>
    %147 = arith.mulf %146, %143 : vector<2x32xf32>
    %148 = arith.addf %145, %147 : vector<2x32xf32>
    %149 = vector.extract_strided_slice %141 {offsets = [0, 96], sizes = [2, 32], strides = [1, 1]} : vector<2x128xf32> to vector<2x32xf32>
    %150 = math.tanh %148 : vector<2x32xf32>
    %151 = arith.mulf %149, %150 : vector<2x32xf32>
    %c3_i32 = arith.constant 3 : i32
    %152 = tpu.concatenate %151, %126 in 1 : vector<2x32xf32>, vector<2x16xf32> -> vector<2x48xf32>
    %153 = arith.truncf %152 : vector<2x48xf32> to vector<2x48xbf16>
    %cst_49 = arith.constant dense<0.000000e+00> : vector<2x192xf32>
    %154 = tpu.matmul %153, %38, %cst_49 {dimension_numbers = #tpu.dot_dimension_numbers<[1], [0], [0], [1], [0, 0, 1, 1], [], []>} : vector<2x48xbf16>, vector<48x192xbf16>, vector<2x192xf32> -> vector<2x192xf32>
    %155 = vector.extract_strided_slice %154 {offsets = [0, 128], sizes = [2, 64], strides = [1, 1]} : vector<2x192xf32> to vector<2x64xf32>
    %156 = vector.broadcast %39 : vector<1x64xf32> to vector<2x64xf32>
    %157 = arith.addf %155, %156 : vector<2x64xf32>
    %158 = arith.negf %157 : vector<2x64xf32>
    %159 = math.exp %158 : vector<2x64xf32>
    %cst_50 = arith.constant 1.000000e+00 : f32
    %160 = vector.broadcast %cst_50 : f32 to vector<2x64xf32>
    %161 = arith.addf %160, %159 : vector<2x64xf32>
    %162 = arith.divf %160, %161 : vector<2x64xf32>
    %163 = vector.extract_strided_slice %157 {offsets = [0, 32], sizes = [2, 16], strides = [1, 1]} : vector<2x64xf32> to vector<2x16xf32>
    %164 = math.tanh %163 : vector<2x16xf32>
    %165 = vector.extract_strided_slice %162 {offsets = [0, 16], sizes = [2, 16], strides = [1, 1]} : vector<2x64xf32> to vector<2x16xf32>
    %166 = arith.mulf %165, %123 : vector<2x16xf32>
    %167 = vector.extract_strided_slice %162 {offsets = [0, 0], sizes = [2, 16], strides = [1, 1]} : vector<2x64xf32> to vector<2x16xf32>
    %168 = arith.mulf %167, %164 : vector<2x16xf32>
    %169 = arith.addf %166, %168 : vector<2x16xf32>
    %170 = vector.extract_strided_slice %162 {offsets = [0, 48], sizes = [2, 16], strides = [1, 1]} : vector<2x64xf32> to vector<2x16xf32>
    %171 = math.tanh %169 : vector<2x16xf32>
    %172 = arith.mulf %170, %171 : vector<2x16xf32>
    %c1_i32_51 = arith.constant 1 : i32
    %173 = arith.subi %c3_i32, %c1_i32_51 : i32
    %174 = arith.index_cast %173 : i32 to index
    %c0_52 = arith.constant 0 : index
    %c0_53 = arith.constant 0 : index
    %175 = vector.load %arg6[%174, %c0_52, %c0_53] : memref<8x2x16xf32, #tpu.memory_space<vmem>>, vector<1x2x16xf32>
    %176 = vector.shape_cast %175 : vector<1x2x16xf32> to vector<2x16xf32>
    %177 = vector.shape_cast %172 : vector<2x16xf32> to vector<1x2x16xf32>
    tpu.vector_store %arg6[%174, %c0_52, %c0_53], %177 {strides = array<i32>} : memref<8x2x16xf32, #tpu.memory_space<vmem>>, vector<1x2x16xf32>,
    %178 = vector.extract_strided_slice %154 {offsets = [0, 0], sizes = [2, 128], strides = [1, 1]} : vector<2x192xf32> to vector<2x128xf32>
    %179 = arith.index_cast %c3_i32 : i32 to index
    %c0_54 = arith.constant 0 : index
    %c0_55 = arith.constant 0 : index
    %180 = vector.load %arg7[%179, %c0_54, %c0_55] : memref<8x2x128xf32, #tpu.memory_space<vmem>>, vector<1x2x128xf32>
    %181 = vector.shape_cast %180 : vector<1x2x128xf32> to vector<2x128xf32>
    %182 = arith.addf %178, %181 : vector<2x128xf32>
    %183 = arith.negf %182 : vector<2x128xf32>
    %184 = math.exp %183 : vector<2x128xf32>
    %cst_56 = arith.constant 1.000000e+00 : f32
    %185 = vector.broadcast %cst_56 : f32 to vector<2x128xf32>
    %186 = arith.addf %185, %184 : vector<2x128xf32>
    %187 = arith.divf %185, %186 : vector<2x128xf32>
    %188 = vector.extract_strided_slice %182 {offsets = [0, 64], sizes = [2, 32], strides = [1, 1]} : vector<2x128xf32> to vector<2x32xf32>
    %189 = math.tanh %188 : vector<2x32xf32>
    %190 = vector.extract_strided_slice %187 {offsets = [0, 32], sizes = [2, 32], strides = [1, 1]} : vector<2x128xf32> to vector<2x32xf32>
    %191 = arith.mulf %190, %148 : vector<2x32xf32>
    %192 = vector.extract_strided_slice %187 {offsets = [0, 0], sizes = [2, 32], strides = [1, 1]} : vector<2x128xf32> to vector<2x32xf32>
    %193 = arith.mulf %192, %189 : vector<2x32xf32>
    %194 = arith.addf %191, %193 : vector<2x32xf32>
    %195 = vector.extract_strided_slice %187 {offsets = [0, 96], sizes = [2, 32], strides = [1, 1]} : vector<2x128xf32> to vector<2x32xf32>
    %196 = math.tanh %194 : vector<2x32xf32>
    %197 = arith.mulf %195, %196 : vector<2x32xf32>
    %c4_i32 = arith.constant 4 : i32
    %198 = tpu.concatenate %197, %172 in 1 : vector<2x32xf32>, vector<2x16xf32> -> vector<2x48xf32>
    %199 = arith.truncf %198 : vector<2x48xf32> to vector<2x48xbf16>
    %cst_57 = arith.constant dense<0.000000e+00> : vector<2x192xf32>
    %200 = tpu.matmul %199, %38, %cst_57 {dimension_numbers = #tpu.dot_dimension_numbers<[1], [0], [0], [1], [0, 0, 1, 1], [], []>} : vector<2x48xbf16>, vector<48x192xbf16>, vector<2x192xf32> -> vector<2x192xf32>
    %201 = vector.extract_strided_slice %200 {offsets = [0, 128], sizes = [2, 64], strides = [1, 1]} : vector<2x192xf32> to vector<2x64xf32>
    %202 = vector.broadcast %39 : vector<1x64xf32> to vector<2x64xf32>
    %203 = arith.addf %201, %202 : vector<2x64xf32>
    %204 = arith.negf %203 : vector<2x64xf32>
    %205 = math.exp %204 : vector<2x64xf32>
    %cst_58 = arith.constant 1.000000e+00 : f32
    %206 = vector.broadcast %cst_58 : f32 to vector<2x64xf32>
    %207 = arith.addf %206, %205 : vector<2x64xf32>
    %208 = arith.divf %206, %207 : vector<2x64xf32>
    %209 = vector.extract_strided_slice %203 {offsets = [0, 32], sizes = [2, 16], strides = [1, 1]} : vector<2x64xf32> to vector<2x16xf32>
    %210 = math.tanh %209 : vector<2x16xf32>
    %211 = vector.extract_strided_slice %208 {offsets = [0, 16], sizes = [2, 16], strides = [1, 1]} : vector<2x64xf32> to vector<2x16xf32>
    %212 = arith.mulf %211, %169 : vector<2x16xf32>
    %213 = vector.extract_strided_slice %208 {offsets = [0, 0], sizes = [2, 16], strides = [1, 1]} : vector<2x64xf32> to vector<2x16xf32>
    %214 = arith.mulf %213, %210 : vector<2x16xf32>
    %215 = arith.addf %212, %214 : vector<2x16xf32>
    %216 = vector.extract_strided_slice %208 {offsets = [0, 48], sizes = [2, 16], strides = [1, 1]} : vector<2x64xf32> to vector<2x16xf32>
    %217 = math.tanh %215 : vector<2x16xf32>
    %218 = arith.mulf %216, %217 : vector<2x16xf32>
    %c1_i32_59 = arith.constant 1 : i32
    %219 = arith.subi %c4_i32, %c1_i32_59 : i32
    %220 = arith.index_cast %219 : i32 to index
    %c0_60 = arith.constant 0 : index
    %c0_61 = arith.constant 0 : index
    %221 = vector.load %arg6[%220, %c0_60, %c0_61] : memref<8x2x16xf32, #tpu.memory_space<vmem>>, vector<1x2x16xf32>
    %222 = vector.shape_cast %221 : vector<1x2x16xf32> to vector<2x16xf32>
    %223 = vector.shape_cast %218 : vector<2x16xf32> to vector<1x2x16xf32>
    tpu.vector_store %arg6[%220, %c0_60, %c0_61], %223 {strides = array<i32>} : memref<8x2x16xf32, #tpu.memory_space<vmem>>, vector<1x2x16xf32>,
    %224 = vector.extract_strided_slice %200 {offsets = [0, 0], sizes = [2, 128], strides = [1, 1]} : vector<2x192xf32> to vector<2x128xf32>
    %225 = arith.index_cast %c4_i32 : i32 to index
    %c0_62 = arith.constant 0 : index
    %c0_63 = arith.constant 0 : index
    %226 = vector.load %arg7[%225, %c0_62, %c0_63] : memref<8x2x128xf32, #tpu.memory_space<vmem>>, vector<1x2x128xf32>
    %227 = vector.shape_cast %226 : vector<1x2x128xf32> to vector<2x128xf32>
    %228 = arith.addf %224, %227 : vector<2x128xf32>
    %229 = arith.negf %228 : vector<2x128xf32>
    %230 = math.exp %229 : vector<2x128xf32>
    %cst_64 = arith.constant 1.000000e+00 : f32
    %231 = vector.broadcast %cst_64 : f32 to vector<2x128xf32>
    %232 = arith.addf %231, %230 : vector<2x128xf32>
    %233 = arith.divf %231, %232 : vector<2x128xf32>
    %234 = vector.extract_strided_slice %228 {offsets = [0, 64], sizes = [2, 32], strides = [1, 1]} : vector<2x128xf32> to vector<2x32xf32>
    %235 = math.tanh %234 : vector<2x32xf32>
    %236 = vector.extract_strided_slice %233 {offsets = [0, 32], sizes = [2, 32], strides = [1, 1]} : vector<2x128xf32> to vector<2x32xf32>
    %237 = arith.mulf %236, %194 : vector<2x32xf32>
    %238 = vector.extract_strided_slice %233 {offsets = [0, 0], sizes = [2, 32], strides = [1, 1]} : vector<2x128xf32> to vector<2x32xf32>
    %239 = arith.mulf %238, %235 : vector<2x32xf32>
    %240 = arith.addf %237, %239 : vector<2x32xf32>
    %241 = vector.extract_strided_slice %233 {offsets = [0, 96], sizes = [2, 32], strides = [1, 1]} : vector<2x128xf32> to vector<2x32xf32>
    %242 = math.tanh %240 : vector<2x32xf32>
    %243 = arith.mulf %241, %242 : vector<2x32xf32>
    %c5_i32 = arith.constant 5 : i32
    %244 = tpu.concatenate %243, %218 in 1 : vector<2x32xf32>, vector<2x16xf32> -> vector<2x48xf32>
    %245 = arith.truncf %244 : vector<2x48xf32> to vector<2x48xbf16>
    %cst_65 = arith.constant dense<0.000000e+00> : vector<2x192xf32>
    %246 = tpu.matmul %245, %38, %cst_65 {dimension_numbers = #tpu.dot_dimension_numbers<[1], [0], [0], [1], [0, 0, 1, 1], [], []>} : vector<2x48xbf16>, vector<48x192xbf16>, vector<2x192xf32> -> vector<2x192xf32>
    %247 = vector.extract_strided_slice %246 {offsets = [0, 128], sizes = [2, 64], strides = [1, 1]} : vector<2x192xf32> to vector<2x64xf32>
    %248 = vector.broadcast %39 : vector<1x64xf32> to vector<2x64xf32>
    %249 = arith.addf %247, %248 : vector<2x64xf32>
    %250 = arith.negf %249 : vector<2x64xf32>
    %251 = math.exp %250 : vector<2x64xf32>
    %cst_66 = arith.constant 1.000000e+00 : f32
    %252 = vector.broadcast %cst_66 : f32 to vector<2x64xf32>
    %253 = arith.addf %252, %251 : vector<2x64xf32>
    %254 = arith.divf %252, %253 : vector<2x64xf32>
    %255 = vector.extract_strided_slice %249 {offsets = [0, 32], sizes = [2, 16], strides = [1, 1]} : vector<2x64xf32> to vector<2x16xf32>
    %256 = math.tanh %255 : vector<2x16xf32>
    %257 = vector.extract_strided_slice %254 {offsets = [0, 16], sizes = [2, 16], strides = [1, 1]} : vector<2x64xf32> to vector<2x16xf32>
    %258 = arith.mulf %257, %215 : vector<2x16xf32>
    %259 = vector.extract_strided_slice %254 {offsets = [0, 0], sizes = [2, 16], strides = [1, 1]} : vector<2x64xf32> to vector<2x16xf32>
    %260 = arith.mulf %259, %256 : vector<2x16xf32>
    %261 = arith.addf %258, %260 : vector<2x16xf32>
    %262 = vector.extract_strided_slice %254 {offsets = [0, 48], sizes = [2, 16], strides = [1, 1]} : vector<2x64xf32> to vector<2x16xf32>
    %263 = math.tanh %261 : vector<2x16xf32>
    %264 = arith.mulf %262, %263 : vector<2x16xf32>
    %c1_i32_67 = arith.constant 1 : i32
    %265 = arith.subi %c5_i32, %c1_i32_67 : i32
    %266 = arith.index_cast %265 : i32 to index
    %c0_68 = arith.constant 0 : index
    %c0_69 = arith.constant 0 : index
    %267 = vector.load %arg6[%266, %c0_68, %c0_69] : memref<8x2x16xf32, #tpu.memory_space<vmem>>, vector<1x2x16xf32>
    %268 = vector.shape_cast %267 : vector<1x2x16xf32> to vector<2x16xf32>
    %269 = vector.shape_cast %264 : vector<2x16xf32> to vector<1x2x16xf32>
    tpu.vector_store %arg6[%266, %c0_68, %c0_69], %269 {strides = array<i32>} : memref<8x2x16xf32, #tpu.memory_space<vmem>>, vector<1x2x16xf32>,
    %270 = vector.extract_strided_slice %246 {offsets = [0, 0], sizes = [2, 128], strides = [1, 1]} : vector<2x192xf32> to vector<2x128xf32>
    %271 = arith.index_cast %c5_i32 : i32 to index
    %c0_70 = arith.constant 0 : index
    %c0_71 = arith.constant 0 : index
    %272 = vector.load %arg7[%271, %c0_70, %c0_71] : memref<8x2x128xf32, #tpu.memory_space<vmem>>, vector<1x2x128xf32>
    %273 = vector.shape_cast %272 : vector<1x2x128xf32> to vector<2x128xf32>
    %274 = arith.addf %270, %273 : vector<2x128xf32>
    %275 = arith.negf %274 : vector<2x128xf32>
    %276 = math.exp %275 : vector<2x128xf32>
    %cst_72 = arith.constant 1.000000e+00 : f32
    %277 = vector.broadcast %cst_72 : f32 to vector<2x128xf32>
    %278 = arith.addf %277, %276 : vector<2x128xf32>
    %279 = arith.divf %277, %278 : vector<2x128xf32>
    %280 = vector.extract_strided_slice %274 {offsets = [0, 64], sizes = [2, 32], strides = [1, 1]} : vector<2x128xf32> to vector<2x32xf32>
    %281 = math.tanh %280 : vector<2x32xf32>
    %282 = vector.extract_strided_slice %279 {offsets = [0, 32], sizes = [2, 32], strides = [1, 1]} : vector<2x128xf32> to vector<2x32xf32>
    %283 = arith.mulf %282, %240 : vector<2x32xf32>
    %284 = vector.extract_strided_slice %279 {offsets = [0, 0], sizes = [2, 32], strides = [1, 1]} : vector<2x128xf32> to vector<2x32xf32>
    %285 = arith.mulf %284, %281 : vector<2x32xf32>
    %286 = arith.addf %283, %285 : vector<2x32xf32>
    %287 = vector.extract_strided_slice %279 {offsets = [0, 96], sizes = [2, 32], strides = [1, 1]} : vector<2x128xf32> to vector<2x32xf32>
    %288 = math.tanh %286 : vector<2x32xf32>
    %289 = arith.mulf %287, %288 : vector<2x32xf32>
    %c6_i32 = arith.constant 6 : i32
    %290 = tpu.concatenate %289, %264 in 1 : vector<2x32xf32>, vector<2x16xf32> -> vector<2x48xf32>
    %291 = arith.truncf %290 : vector<2x48xf32> to vector<2x48xbf16>
    %cst_73 = arith.constant dense<0.000000e+00> : vector<2x192xf32>
    %292 = tpu.matmul %291, %38, %cst_73 {dimension_numbers = #tpu.dot_dimension_numbers<[1], [0], [0], [1], [0, 0, 1, 1], [], []>} : vector<2x48xbf16>, vector<48x192xbf16>, vector<2x192xf32> -> vector<2x192xf32>
    %293 = vector.extract_strided_slice %292 {offsets = [0, 128], sizes = [2, 64], strides = [1, 1]} : vector<2x192xf32> to vector<2x64xf32>
    %294 = vector.broadcast %39 : vector<1x64xf32> to vector<2x64xf32>
    %295 = arith.addf %293, %294 : vector<2x64xf32>
    %296 = arith.negf %295 : vector<2x64xf32>
    %297 = math.exp %296 : vector<2x64xf32>
    %cst_74 = arith.constant 1.000000e+00 : f32
    %298 = vector.broadcast %cst_74 : f32 to vector<2x64xf32>
    %299 = arith.addf %298, %297 : vector<2x64xf32>
    %300 = arith.divf %298, %299 : vector<2x64xf32>
    %301 = vector.extract_strided_slice %295 {offsets = [0, 32], sizes = [2, 16], strides = [1, 1]} : vector<2x64xf32> to vector<2x16xf32>
    %302 = math.tanh %301 : vector<2x16xf32>
    %303 = vector.extract_strided_slice %300 {offsets = [0, 16], sizes = [2, 16], strides = [1, 1]} : vector<2x64xf32> to vector<2x16xf32>
    %304 = arith.mulf %303, %261 : vector<2x16xf32>
    %305 = vector.extract_strided_slice %300 {offsets = [0, 0], sizes = [2, 16], strides = [1, 1]} : vector<2x64xf32> to vector<2x16xf32>
    %306 = arith.mulf %305, %302 : vector<2x16xf32>
    %307 = arith.addf %304, %306 : vector<2x16xf32>
    %308 = vector.extract_strided_slice %300 {offsets = [0, 48], sizes = [2, 16], strides = [1, 1]} : vector<2x64xf32> to vector<2x16xf32>
    %309 = math.tanh %307 : vector<2x16xf32>
    %310 = arith.mulf %308, %309 : vector<2x16xf32>
    %c1_i32_75 = arith.constant 1 : i32
    %311 = arith.subi %c6_i32, %c1_i32_75 : i32
    %312 = arith.index_cast %311 : i32 to index
    %c0_76 = arith.constant 0 : index
    %c0_77 = arith.constant 0 : index
    %313 = vector.load %arg6[%312, %c0_76, %c0_77] : memref<8x2x16xf32, #tpu.memory_space<vmem>>, vector<1x2x16xf32>
    %314 = vector.shape_cast %313 : vector<1x2x16xf32> to vector<2x16xf32>
    %315 = vector.shape_cast %310 : vector<2x16xf32> to vector<1x2x16xf32>
    tpu.vector_store %arg6[%312, %c0_76, %c0_77], %315 {strides = array<i32>} : memref<8x2x16xf32, #tpu.memory_space<vmem>>, vector<1x2x16xf32>,
    %316 = vector.extract_strided_slice %292 {offsets = [0, 0], sizes = [2, 128], strides = [1, 1]} : vector<2x192xf32> to vector<2x128xf32>
    %317 = arith.index_cast %c6_i32 : i32 to index
    %c0_78 = arith.constant 0 : index
    %c0_79 = arith.constant 0 : index
    %318 = vector.load %arg7[%317, %c0_78, %c0_79] : memref<8x2x128xf32, #tpu.memory_space<vmem>>, vector<1x2x128xf32>
    %319 = vector.shape_cast %318 : vector<1x2x128xf32> to vector<2x128xf32>
    %320 = arith.addf %316, %319 : vector<2x128xf32>
    %321 = arith.negf %320 : vector<2x128xf32>
    %322 = math.exp %321 : vector<2x128xf32>
    %cst_80 = arith.constant 1.000000e+00 : f32
    %323 = vector.broadcast %cst_80 : f32 to vector<2x128xf32>
    %324 = arith.addf %323, %322 : vector<2x128xf32>
    %325 = arith.divf %323, %324 : vector<2x128xf32>
    %326 = vector.extract_strided_slice %320 {offsets = [0, 64], sizes = [2, 32], strides = [1, 1]} : vector<2x128xf32> to vector<2x32xf32>
    %327 = math.tanh %326 : vector<2x32xf32>
    %328 = vector.extract_strided_slice %325 {offsets = [0, 32], sizes = [2, 32], strides = [1, 1]} : vector<2x128xf32> to vector<2x32xf32>
    %329 = arith.mulf %328, %286 : vector<2x32xf32>
    %330 = vector.extract_strided_slice %325 {offsets = [0, 0], sizes = [2, 32], strides = [1, 1]} : vector<2x128xf32> to vector<2x32xf32>
    %331 = arith.mulf %330, %327 : vector<2x32xf32>
    %332 = arith.addf %329, %331 : vector<2x32xf32>
    %333 = vector.extract_strided_slice %325 {offsets = [0, 96], sizes = [2, 32], strides = [1, 1]} : vector<2x128xf32> to vector<2x32xf32>
    %334 = math.tanh %332 : vector<2x32xf32>
    %335 = arith.mulf %333, %334 : vector<2x32xf32>
    %c7_i32 = arith.constant 7 : i32
    %336 = tpu.concatenate %335, %310 in 1 : vector<2x32xf32>, vector<2x16xf32> -> vector<2x48xf32>
    %337 = arith.truncf %336 : vector<2x48xf32> to vector<2x48xbf16>
    %cst_81 = arith.constant dense<0.000000e+00> : vector<2x192xf32>
    %338 = tpu.matmul %337, %38, %cst_81 {dimension_numbers = #tpu.dot_dimension_numbers<[1], [0], [0], [1], [0, 0, 1, 1], [], []>} : vector<2x48xbf16>, vector<48x192xbf16>, vector<2x192xf32> -> vector<2x192xf32>
    %339 = vector.extract_strided_slice %338 {offsets = [0, 128], sizes = [2, 64], strides = [1, 1]} : vector<2x192xf32> to vector<2x64xf32>
    %340 = vector.broadcast %39 : vector<1x64xf32> to vector<2x64xf32>
    %341 = arith.addf %339, %340 : vector<2x64xf32>
    %342 = arith.negf %341 : vector<2x64xf32>
    %343 = math.exp %342 : vector<2x64xf32>
    %cst_82 = arith.constant 1.000000e+00 : f32
    %344 = vector.broadcast %cst_82 : f32 to vector<2x64xf32>
    %345 = arith.addf %344, %343 : vector<2x64xf32>
    %346 = arith.divf %344, %345 : vector<2x64xf32>
    %347 = vector.extract_strided_slice %341 {offsets = [0, 32], sizes = [2, 16], strides = [1, 1]} : vector<2x64xf32> to vector<2x16xf32>
    %348 = math.tanh %347 : vector<2x16xf32>
    %349 = vector.extract_strided_slice %346 {offsets = [0, 16], sizes = [2, 16], strides = [1, 1]} : vector<2x64xf32> to vector<2x16xf32>
    %350 = arith.mulf %349, %307 : vector<2x16xf32>
    %351 = vector.extract_strided_slice %346 {offsets = [0, 0], sizes = [2, 16], strides = [1, 1]} : vector<2x64xf32> to vector<2x16xf32>
    %352 = arith.mulf %351, %348 : vector<2x16xf32>
    %353 = arith.addf %350, %352 : vector<2x16xf32>
    %354 = vector.extract_strided_slice %346 {offsets = [0, 48], sizes = [2, 16], strides = [1, 1]} : vector<2x64xf32> to vector<2x16xf32>
    %355 = math.tanh %353 : vector<2x16xf32>
    %356 = arith.mulf %354, %355 : vector<2x16xf32>
    %c1_i32_83 = arith.constant 1 : i32
    %357 = arith.subi %c7_i32, %c1_i32_83 : i32
    %358 = arith.index_cast %357 : i32 to index
    %c0_84 = arith.constant 0 : index
    %c0_85 = arith.constant 0 : index
    %359 = vector.load %arg6[%358, %c0_84, %c0_85] : memref<8x2x16xf32, #tpu.memory_space<vmem>>, vector<1x2x16xf32>
    %360 = vector.shape_cast %359 : vector<1x2x16xf32> to vector<2x16xf32>
    %361 = vector.shape_cast %356 : vector<2x16xf32> to vector<1x2x16xf32>
    tpu.vector_store %arg6[%358, %c0_84, %c0_85], %361 {strides = array<i32>} : memref<8x2x16xf32, #tpu.memory_space<vmem>>, vector<1x2x16xf32>,
    %362 = vector.extract_strided_slice %338 {offsets = [0, 0], sizes = [2, 128], strides = [1, 1]} : vector<2x192xf32> to vector<2x128xf32>
    %363 = arith.index_cast %c7_i32 : i32 to index
    %c0_86 = arith.constant 0 : index
    %c0_87 = arith.constant 0 : index
    %364 = vector.load %arg7[%363, %c0_86, %c0_87] : memref<8x2x128xf32, #tpu.memory_space<vmem>>, vector<1x2x128xf32>
    %365 = vector.shape_cast %364 : vector<1x2x128xf32> to vector<2x128xf32>
    %366 = arith.addf %362, %365 : vector<2x128xf32>
    %367 = arith.negf %366 : vector<2x128xf32>
    %368 = math.exp %367 : vector<2x128xf32>
    %cst_88 = arith.constant 1.000000e+00 : f32
    %369 = vector.broadcast %cst_88 : f32 to vector<2x128xf32>
    %370 = arith.addf %369, %368 : vector<2x128xf32>
    %371 = arith.divf %369, %370 : vector<2x128xf32>
    %372 = vector.extract_strided_slice %366 {offsets = [0, 64], sizes = [2, 32], strides = [1, 1]} : vector<2x128xf32> to vector<2x32xf32>
    %373 = math.tanh %372 : vector<2x32xf32>
    %374 = vector.extract_strided_slice %371 {offsets = [0, 32], sizes = [2, 32], strides = [1, 1]} : vector<2x128xf32> to vector<2x32xf32>
    %375 = arith.mulf %374, %332 : vector<2x32xf32>
    %376 = vector.extract_strided_slice %371 {offsets = [0, 0], sizes = [2, 32], strides = [1, 1]} : vector<2x128xf32> to vector<2x32xf32>
    %377 = arith.mulf %376, %373 : vector<2x32xf32>
    %378 = arith.addf %375, %377 : vector<2x32xf32>
    %379 = vector.extract_strided_slice %371 {offsets = [0, 96], sizes = [2, 32], strides = [1, 1]} : vector<2x128xf32> to vector<2x32xf32>
    %380 = math.tanh %378 : vector<2x32xf32>
    %381 = arith.mulf %379, %380 : vector<2x32xf32>
    %c7_i32_89 = arith.constant 7 : i32
    %382 = tpu.concatenate %381, %356 in 1 : vector<2x32xf32>, vector<2x16xf32> -> vector<2x48xf32>
    %383 = arith.truncf %382 : vector<2x48xf32> to vector<2x48xbf16>
    %cst_90 = arith.constant dense<0.000000e+00> : vector<2x192xf32>
    %384 = tpu.matmul %383, %38, %cst_90 {dimension_numbers = #tpu.dot_dimension_numbers<[1], [0], [0], [1], [0, 0, 1, 1], [], []>} : vector<2x48xbf16>, vector<48x192xbf16>, vector<2x192xf32> -> vector<2x192xf32>
    %385 = vector.extract_strided_slice %384 {offsets = [0, 128], sizes = [2, 64], strides = [1, 1]} : vector<2x192xf32> to vector<2x64xf32>
    %386 = vector.broadcast %39 : vector<1x64xf32> to vector<2x64xf32>
    %387 = arith.addf %385, %386 : vector<2x64xf32>
    %388 = arith.negf %387 : vector<2x64xf32>
    %389 = math.exp %388 : vector<2x64xf32>
    %cst_91 = arith.constant 1.000000e+00 : f32
    %390 = vector.broadcast %cst_91 : f32 to vector<2x64xf32>
    %391 = arith.addf %390, %389 : vector<2x64xf32>
    %392 = arith.divf %390, %391 : vector<2x64xf32>
    %393 = vector.extract_strided_slice %387 {offsets = [0, 32], sizes = [2, 16], strides = [1, 1]} : vector<2x64xf32> to vector<2x16xf32>
    %394 = math.tanh %393 : vector<2x16xf32>
    %395 = vector.extract_strided_slice %392 {offsets = [0, 16], sizes = [2, 16], strides = [1, 1]} : vector<2x64xf32> to vector<2x16xf32>
    %396 = arith.mulf %395, %353 : vector<2x16xf32>
    %397 = vector.extract_strided_slice %392 {offsets = [0, 0], sizes = [2, 16], strides = [1, 1]} : vector<2x64xf32> to vector<2x16xf32>
    %398 = arith.mulf %397, %394 : vector<2x16xf32>
    %399 = arith.addf %396, %398 : vector<2x16xf32>
    %400 = vector.extract_strided_slice %392 {offsets = [0, 48], sizes = [2, 16], strides = [1, 1]} : vector<2x64xf32> to vector<2x16xf32>
    %401 = math.tanh %399 : vector<2x16xf32>
    %402 = arith.mulf %400, %401 : vector<2x16xf32>
    %c7_92 = arith.constant 7 : index
    %c0_93 = arith.constant 0 : index
    %c0_94 = arith.constant 0 : index
    %403 = vector.load %arg6[%c7_92, %c0_93, %c0_94] : memref<8x2x16xf32, #tpu.memory_space<vmem>>, vector<1x2x16xf32>
    %404 = vector.shape_cast %403 : vector<1x2x16xf32> to vector<2x16xf32>
    %405 = vector.shape_cast %402 : vector<2x16xf32> to vector<1x2x16xf32>
    tpu.vector_store %arg6[%c7_92, %c0_93, %c0_94], %405 {strides = array<i32>} : memref<8x2x16xf32, #tpu.memory_space<vmem>>, vector<1x2x16xf32>,
    return
  }
  func.func @transform_0(%arg0: i32) -> (i32, i32) {
    %c0_i32 = arith.constant 0 : i32
    %c0_i32_0 = arith.constant 0 : i32
    return %arg0, %c0_i32 : i32, i32
  }
  func.func @transform_1(%arg0: i32) -> (i32, i32) {
    %c0_i32 = arith.constant 0 : i32
    %c0_i32_0 = arith.constant 0 : i32
    %c0_i32_1 = arith.constant 0 : i32
    return %c0_i32, %c0_i32_0 : i32, i32
  }
  func.func @transform_2(%arg0: i32) -> (i32, i32) {
    %c0_i32 = arith.constant 0 : i32
    %c0_i32_0 = arith.constant 0 : i32
    %c0_i32_1 = arith.constant 0 : i32
    return %c0_i32, %c0_i32_0 : i32, i32
  }
  func.func @transform_3(%arg0: i32) -> (i32, i32) {
    %c0_i32 = arith.constant 0 : i32
    %c0_i32_0 = arith.constant 0 : i32
    %c0_i32_1 = arith.constant 0 : i32
    return %c0_i32, %c0_i32_0 : i32, i32
  }
  func.func @transform_4(%arg0: i32) -> (i32, i32) {
    %c0_i32 = arith.constant 0 : i32
    %c0_i32_0 = arith.constant 0 : i32
    %c0_i32_1 = arith.constant 0 : i32
    return %c0_i32, %c0_i32_0 : i32, i32
  }
  func.func @transform_5(%arg0: i32) -> (i32, i32, i32) {
    %c0_i32 = arith.constant 0 : i32
    %c0_i32_0 = arith.constant 0 : i32
    %c0_i32_1 = arith.constant 0 : i32
    return %arg0, %c0_i32, %c0_i32_0 : i32, i32, i32
  }
}

</mosaic_0001>

<bundles_post_ra>
// kernel: tpu_custom_call.1
= control target key start
LH: loop header
LB: loop body
LE: loop exit
PB: predicated region body
PF: predicated region fallthrough
CT: control target
= control target key end

     0   :  { %10 = vsyncpa [#allocation8], 0  ;;  %s1768_s0 = inlined_call_operand.hbm [shape: bf16[16,16], index: 0, kind: input, shape index: {}]   ;;  %s1769_s1 = inlined_call_operand.hbm [shape: bf16[16,128], index: 1, kind: input, shape index: {}]   ;;  %s1770_s2 = inlined_call_operand.vmem [shape: f32[1,128], index: 2, kind: input, shape index: {}]   ;;  %s1771_s3 = inlined_call_operand.hbm [shape: bf16[48,192], index: 3, kind: input, shape index: {}]   ;;  %s1772_s4 = inlined_call_operand.vmem [shape: f32[1,64], index: 4, kind: input, shape index: {}]   ;;  %s1773_s5 = inlined_call_operand.hbm [shape: f32[8,2,16], index: 5, kind: output, shape index: {}]  }
   0x1   :  { %11 = vsyncpa [#allocation11], 0 }
   0x2   :  { %12 = vsyncpa [#allocation9], 0  ;;  %s30_s20 = sshll.u32 %s1769_s1, 4  ;;  %s1453_s21 = smov [#allocation10]   ;;  %s31_s20 = int_to_ptr.hbm [resolvable:$true] %s30_s20 }
   0x3   :  { %s32_s22 = sshll.u32 %s1453_s21, 4  ;;  %s17_s25 = sshll.u32 %s1768_s0, 4  ;;  %s33_s22 = int_to_ptr.vmem [resolvable:$true] %s32_s22  ;;  %s18_s25 = int_to_ptr.hbm [resolvable:$true] %s17_s25 }
   0x4   :  { %s1454_s26 = smov 64   ;;  %s1455_s27 = smov 4  }
   0x5   :  { %38 = dma.hbm_to_vmem [thread:$0]  %s31_s20, 128, %s33_s22, [#allocation11], %s1454_s26, %s1454_s26, %s1455_s27  }
   0x6   :  { %s1456_s28 = smov [#allocation7]   ;;  %s45_s1 = sshll.u32 %s1771_s3, 4  ;;  %s46_s1 = int_to_ptr.hbm [resolvable:$true] %s45_s1 }
   0x7   :  { %s19_s29 = sshll.u32 %s1456_s28, 4  ;;  %s1457_s7 = smov [#allocation12]   ;;  %s20_s29 = int_to_ptr.vmem [resolvable:$true] %s19_s29 }
   0x8   :  { %25 = dma.hbm_to_vmem [thread:$0]  %s18_s25, 128, %s20_s29, [#allocation8], %s1454_s26, %s1454_s26, %s1455_s27  }
   0x9   :  { %s47_s8 = sshll.u32 %s1457_s7, 4  ;;  %s1458_s0 = smov 128   ;;  %s48_s8 = int_to_ptr.vmem [resolvable:$true] %s47_s8 }
   0xa   :  { %s1459_s9 = smov 8  }
   0xb   :  { %53 = dma.hbm_to_vmem [thread:$0]  %s46_s1, 768, %s48_s8, [#allocation11], %s1458_s0, %s1458_s0, %s1459_s9  }
   0xc   :  { %1447 = dma.done.wait [#allocation8], 128  }
   0xd   :  { %1448 = vsyncadd [#allocation8], 4294967168 }
   0xe   :  { %1449 = dma.done.wait [#allocation11], 896  }
   0xf   :  { %1450 = vsyncadd [#allocation11], 4294966400  ;;  %v1199_v0 = vld [vmem:[#allocation10] sm:$0xff]  ;;  %v1198_v1 = vld [vmem:[#allocation7] sm:$0xff]  ;;  %vm88_vm0 = vcmask 130048   ;;  %vm170_vm5 = vcmask 261120  }
  0x10   :  { %99 = vmatpush.bf16.msra.mxu0 %v1199_v0  ;;  %v1220_v2 = vld [vmem:[%s1770_s2] ss:$0 sm:$0xff]  ;;  %s1460_s2 = smov 32   ;;  %v1205_v29 = vld [vmem:[#allocation12 + $0x24] sm:$0xf0]  ;;  %vm203_vm6 = vcmask 392192  }
  0x11   :  { %v1162_v28 = vld [vmem:[#allocation12 + $0x20] sm:$0xf]  ;;  %v1204_v30 = vld [vmem:[#allocation12 + $0x24] sm:$0xf]  ;;  %v1164_v32 = vld [vmem:[#allocation12 + $0x28] sm:$0xf0] }
  0x12   :  { %v1519_v31 = vor.u32 %v1205_v29, %v1162_v28  ;;  %v1154_v33 = vld [vmem:[#allocation12 + $0x10] sm:$0xf]  ;;  %v1203_v34 = vld [vmem:[#allocation12 + $0x14] sm:$0xf0]  ;;  %v1521_v35 = vor.u32 %v1204_v30, %v1164_v32  ;;  %v1202_v36 = vld [vmem:[#allocation12 + $0x14] sm:$0xf] }
  0x13   :  { %1142 = vmatmul.msk.bf16.vlgmr.msra.gmra.mxu0 %vm88_vm0, %v1198_v1  ;;  %v1156_v37 = vld [vmem:[#allocation12 + $0x18] sm:$0xf0]  ;;  %v1524_v38 = vor.u32 %v1203_v34, %v1154_v33  ;;  %v1146_v42 = vld [vmem:[#allocation12] sm:$0xf]  ;;  %v1201_v43 = vld [vmem:[#allocation12 + $0x4] sm:$0xf0] }
  0x14   :  { %212 = vmatpush.bf16.msra.mxu1 %v1519_v31  ;;  %336 = vmatpush.bf16.msra.mxu3 %v1519_v31  ;;  %v1528_v39 = vor.u32 %v1202_v36, %v1156_v37  ;;  %v1200_v44 = vld [vmem:[#allocation12 + $0x4] sm:$0xf]  ;;  %v1536_v45 = vor.u32 %v1201_v43, %v1146_v42  ;;  %v1148_v46 = vld [vmem:[#allocation12 + $0x8] sm:$0xf0]  ;;  %v1568_v52 = vld [vmem:[%s1772_s4] ss:$0 sm:$0xff] }
  0x15   :  { %225 = vmatpush.bf16.msra.mxu2 %v1521_v35  ;;  %349 = vmatpush.bf16.msrb.mxu0 %v1521_v35  ;;  %v1538_v47 = vor.u32 %v1200_v44, %v1148_v46  ;;  %s1461_s13 = smov 96   ;;  %s1462_s14 = smov 16  }
  0x16   :  { %s1463_s15 = smov 112   ;;  %s1464_s18 = smov 80  }
  0x17   :  { %s1120_s20 = sshll.u32 %s1773_s5, 4  ;;  %s1465_s21 = smov [#allocation13]   ;;  %s1121_s20 = int_to_ptr.hbm [resolvable:$true] %s1120_s20 }
  0x18   :  { %213 = vmatpush.bf16.msra.mxu1 %v1524_v38  ;;  %337 = vmatpush.bf16.msra.mxu3 %v1524_v38  ;;  %s1118_s22 = sshll.u32 %s1465_s21, 4  ;;  %s1466_s23 = smov 2   ;;  %s1119_s22 = int_to_ptr.vmem [resolvable:$true] %s1118_s22 }
  0x19   :  { %226 = vmatpush.bf16.msra.mxu2 %v1528_v39  ;;  %350 = vmatpush.bf16.msrb.mxu0 %v1528_v39 }
  0x1c   :  { %214 = vmatpush.bf16.msra.mxu1 %v1536_v45  ;;  %338 = vmatpush.bf16.msra.mxu3 %v1536_v45 }
  0x1d   :  { %227 = vmatpush.bf16.msra.mxu2 %v1538_v47  ;;  %351 = vmatpush.bf16.msrb.mxu0 %v1538_v47 }
  0x20   :  { %457 = vmatpush.bf16.msrb.mxu1 %v1519_v31  ;;  %578 = vmatpush.bf16.msrb.mxu3 %v1519_v31 }
  0x21   :  { %470 = vmatpush.bf16.msrb.mxu2 %v1521_v35  ;;  %591 = vmatpush.bf16.msra.mxu0 %v1521_v35 }
  0x24   :  { %458 = vmatpush.bf16.msrb.mxu1 %v1524_v38  ;;  %579 = vmatpush.bf16.msrb.mxu3 %v1524_v38 }
  0x25   :  { %471 = vmatpush.bf16.msrb.mxu2 %v1528_v39  ;;  %592 = vmatpush.bf16.msra.mxu0 %v1528_v39 }
  0x28   :  { %459 = vmatpush.bf16.msrb.mxu1 %v1536_v45  ;;  %580 = vmatpush.bf16.msrb.mxu3 %v1536_v45 }
  0x29   :  { %472 = vmatpush.bf16.msrb.mxu2 %v1538_v47  ;;  %593 = vmatpush.bf16.msra.mxu0 %v1538_v47 }
  0x90   :  { %v101_v3 = vpop.f32.mrf.mxu0 }
  0x91   :  { %v102_v4 = vadd.f32 %v1220_v2, %v101_v3 }
  0x93   :  { %106 = vst [vmem:[#allocation2] sm:$0xf] %v102_v4  }
  0x94   :  { %110 = vst [vmem:[#allocation2] sm:$0xf0] %v102_v4  }
  0x98   :  { %v103_v5 = vpop.f32.mrf.mxu0 }
  0x99   :  { %v104_v6 = vadd.f32 %v1220_v2, %v103_v5 }
  0x9a   :  { %v128_v7 = vld [vmem:[#allocation2] sm:$0x3]  ;;  %v280_v56 = vld [vmem:[#allocation2 + $0x2] sm:$0x3] }
  0x9b   :  { %114 = vst [vmem:[#allocation2 + $0x8] sm:$0xf] %v104_v6   ;;  %1222 = vtanh.f32 %v128_v7  ;;  %v1143_v9 = vmul.f32 -1.442695, %v128_v7 }
  0x9c   :  { %118 = vst [vmem:[#allocation2 + $0x8] sm:$0xf0] %v104_v6  }
  0x9d   :  { %1224 = vpow2.f32 %v1143_v9 }
  0xa1   :  { %v1223_v8 = vpop.eup %1222 }
  0xa2   :  { %151 = vrot.lane.b32.xlu0 %v1223_v8, %s1454_s26 }
  0xa3   :  { %v1225_v10 = vpop.eup %1224 }
  0xa4   :  { %v132_v11 = vadd.f32 1.0, %v1225_v10 }
  0xa6   :  { %1226 = vrcp.f32 %v132_v11  ;;  %v144_v17 = vand.u32 2147483648, %v132_v11  ;;  %vm138_vm2 = vweird.f32 %v132_v11  ;;  %v142_v18 = vand.u32 2147483647, %v132_v11 }
  0xa8   :  { %v145_v20 = vor.u32 1.1754944e-38, %v144_v17  ;;  %vm143_vm4 = vcmp.eq.f32.partialorder %v142_v18, 8.507059e+37 }
  0xac   :  { %v1227_v12 = vpop.eup %1226 }
  0xad   :  { %v134_v13 = vmul.f32 %v1227_v12, %v132_v11  ;;  %vm139_vm1 = vweird.f32 %v1227_v12 }
  0xae   :  { %vm140_vm3 = vmor %vm138_vm2, %vm139_vm1 }
  0xaf   :  { %v135_v14 = vsub.f32 1.0, %v134_v13 }
  0xb1   :  { %v136_v15 = vmul.f32 %v1227_v12, %v135_v14 }
  0xb3   :  { %v137_v16 = vadd.f32 %v1227_v12, %v136_v15 }
  0xb5   :  { %v141_v19 = vsel %vm140_vm3, %v1227_v12, %v137_v16 }
  0xb6   :  { %v146_v22 = vsel %vm143_vm4, %v145_v20, %v141_v19 }
  0xb7   :  { %v149_v24 = vmul.f32 0.0, %v146_v22 }
 0x114   :  { %v152_v21 = vpop.permute.xlu0 %151 }
 0x115   :  { %v154_v23 = vmul.f32 %v152_v21, %v146_v22 }
 0x117   :  { %156 = vrot.lane.b32.xlu0 %v154_v23, %s1460_s2 }
 0x189   :  { %v157_v25 = vpop.permute.xlu0 %156 }
 0x18a   :  { %v1515_v26 = vadd.f32 %v157_v25, %v149_v24 }
 0x18c   :  { %1228 = vtanh.f32 %v1515_v26 }
 0x192   :  { %v1229_v27 = vpop.eup %1228 }
 0x193   :  { %162 = vrot.lane.b32.xlu1 %v1229_v27, %s1454_s26 }
 0x205   :  { %v163_v40 = vpop.permute.xlu1 %162 }
 0x206   :  { %v165_v41 = vmul.f32 %v163_v40, %v146_v22 }
 0x208   :  { %167 = vrot.lane.b32.xlu1 %v165_v41, %s1460_s2 }
 0x27a   :  { %v168_v48 = vpop.permute.xlu1 %167 }
 0x27b   :  { %v171_v49 = vsel %vm170_vm5, %v168_v48, 0.0 }
 0x27c   :  { %v172_v50 = vpack.c.bf16 %v171_v49, %v171_v49 }
 0x27e   :  { %1168 = vmatmul.msk.bf16.vlgmr.msra.gmra.mxu1 %vm203_vm6, %v172_v50  ;;  %1169 = vmatmul.msk.bf16.vlgmr.msra.gmra.mxu2 %vm203_vm6, %v172_v50 }
 0x27f   :  { %712 = vmatpush.bf16.msra.mxu2 %v1521_v35  ;;  %699 = vmatpush.bf16.msra.mxu1 %v1519_v31 }
 0x283   :  { %713 = vmatpush.bf16.msra.mxu2 %v1528_v39  ;;  %700 = vmatpush.bf16.msra.mxu1 %v1524_v38 }
 0x287   :  { %714 = vmatpush.bf16.msra.mxu2 %v1538_v47  ;;  %701 = vmatpush.bf16.msra.mxu1 %v1536_v45 }
 0x2fb   :  { %v216_v51 = vpop.f32.mrf.mxu1 }
 0x2fc   :  { %v281_v57 = vadd.f32 %v280_v56, %v216_v51 }
 0x2fe   :  { %v1171_v62 = vmul.f32 -1.442695, %v281_v57 }
 0x301   :  { %v229_v53 = vpop.f32.mrf.mxu2 }
 0x302   :  { %v236_v54 = vadd.f32 %v1568_v52, %v229_v53  ;;  %v401_v53 = vld [vmem:[#allocation2 + $0x4] sm:$0x3] }
 0x303   :  { %v218_v55 = vpop.f32.mrf.mxu1 }
 0x304   :  { %1230 = vtanh.f32 %v236_v54  ;;  %v1170_v61 = vmul.f32 -1.442695, %v236_v54 }
 0x305   :  { %1232 = vtanh.f32 %v281_v57 }
 0x306   :  { %1234 = vpow2.f32 %v1170_v61 }
 0x307   :  { %1236 = vpow2.f32 %v1171_v62 }
 0x309   :  { %v231_v58 = vpop.f32.mrf.mxu2 }
 0x30a   :  { %v1231_v59 = vpop.eup %1230 }
 0x30b   :  { %259 = vrot.lane.b32.xlu2 %v1231_v59, %s1461_s13  ;;  %v1233_v60 = vpop.eup %1232 }
 0x30c   :  { %v1235_v63 = vpop.eup %1234 }
 0x30d   :  { %v240_v0 = vadd.f32 1.0, %v1235_v63  ;;  %v1237_v1 = vpop.eup %1236 }
 0x30e   :  { %v285_v2 = vadd.f32 1.0, %v1237_v1 }
 0x30f   :  { %1238 = vrcp.f32 %v240_v0  ;;  %v252_v11 = vand.u32 2147483648, %v240_v0  ;;  %vm246_vm8 = vweird.f32 %v240_v0  ;;  %v250_v12 = vand.u32 2147483647, %v240_v0 }
 0x310   :  { %1240 = vrcp.f32 %v285_v2  ;;  %v297_v20 = vand.u32 2147483648, %v285_v2  ;;  %vm291_vm12 = vweird.f32 %v285_v2  ;;  %v295_v21 = vand.u32 2147483647, %v285_v2 }
 0x311   :  { %v253_v15 = vor.u32 1.1754944e-38, %v252_v11  ;;  %vm251_vm10 = vcmp.eq.f32.partialorder %v250_v12, 8.507059e+37 }
 0x312   :  { %v298_v23 = vor.u32 1.1754944e-38, %v297_v20  ;;  %vm296_vm14 = vcmp.eq.f32.partialorder %v295_v21, 8.507059e+37 }
 0x313   :  { %304 = vrot.lane.b32.xlu2 %v1233_v60, %s1454_s26 }
 0x315   :  { %v1239_v3 = vpop.eup %1238 }
 0x316   :  { %v242_v4 = vmul.f32 %v1239_v3, %v240_v0  ;;  %v1241_v6 = vpop.eup %1240  ;;  %vm247_vm7 = vweird.f32 %v1239_v3 }
 0x317   :  { %v287_v8 = vmul.f32 %v1241_v6, %v285_v2  ;;  %vm248_vm9 = vmor %vm246_vm8, %vm247_vm7  ;;  %vm292_vm11 = vweird.f32 %v1241_v6 }
 0x318   :  { %v243_v5 = vsub.f32 1.0, %v242_v4  ;;  %vm293_vm13 = vmor %vm291_vm12, %vm292_vm11 }
 0x319   :  { %v288_v10 = vsub.f32 1.0, %v287_v8 }
 0x31a   :  { %v244_v7 = vmul.f32 %v1239_v3, %v243_v5 }
 0x31b   :  { %v289_v14 = vmul.f32 %v1241_v6, %v288_v10 }
 0x31c   :  { %v245_v9 = vadd.f32 %v1239_v3, %v244_v7 }
 0x31d   :  { %v290_v19 = vadd.f32 %v1241_v6, %v289_v14 }
 0x31e   :  { %v249_v13 = vsel %vm248_vm9, %v1239_v3, %v245_v9 }
 0x31f   :  { %v254_v17 = vsel %vm251_vm10, %v253_v15, %v249_v13  ;;  %v294_v22 = vsel %vm293_vm13, %v1241_v6, %v290_v19 }
 0x320   :  { %v299_v25 = vsel %vm296_vm14, %v298_v23, %v294_v22  ;;  %v257_v28 = vmul.f32 0.0, %v254_v17 }
 0x321   :  { %v302_v32 = vmul.f32 %v299_v25, %v1515_v26 }
 0x365   :  { %v260_v16 = vpop.permute.xlu2 %259 }
 0x366   :  { %v262_v18 = vmul.f32 %v260_v16, %v254_v17 }
 0x368   :  { %264 = vrot.lane.b32.xlu0 %v262_v18, %s1462_s14 }
 0x36d   :  { %v305_v24 = vpop.permute.xlu2 %304 }
 0x36e   :  { %v307_v27 = vmul.f32 %v305_v24, %v299_v25 }
 0x370   :  { %309 = vrot.lane.b32.xlu1 %v307_v27, %s1460_s2 }
 0x3da   :  { %v265_v29 = vpop.permute.xlu0 %264 }
 0x3db   :  { %v1575_v30 = vadd.f32 %v265_v29, %v257_v28 }
 0x3dd   :  { %1242 = vtanh.f32 %v1575_v30 }
 0x3e2   :  { %v310_v33 = vpop.permute.xlu1 %309 }
 0x3e3   :  { %v1243_v34 = vpop.eup %1242  ;;  %v1579_v36 = vadd.f32 %v310_v33, %v302_v32 }
 0x3e4   :  { %270 = vrot.lane.b32.xlu2 %v1243_v34, %s1460_s2 }
 0x3e5   :  { %1244 = vtanh.f32 %v1579_v36 }
 0x3eb   :  { %v1245_v37 = vpop.eup %1244 }
 0x3ec   :  { %315 = vrot.lane.b32.xlu0 %v1245_v37, %s1454_s26 }
 0x43e   :  { %v271_v40 = vpop.permute.xlu2 %270 }
 0x43f   :  { %v1584_v41 = vmul.f32 %v271_v40, %v254_v17 }
 0x441   :  { %323 = vrot.lane.b32.xlu2 %v1584_v41, %s1463_s15 }
 0x45e   :  { %v316_v42 = vpop.permute.xlu0 %315 }
 0x45f   :  { %v318_v26 = vmul.f32 %v316_v42, %v299_v25 }
 0x461   :  { %320 = vrot.lane.b32.xlu1 %v318_v26, %s1460_s2 }
 0x49b   :  { %v324_v43 = vpop.permute.xlu2 %323 }
 0x4d3   :  { %v321_v44 = vpop.permute.xlu1 %320 }
 0x4d4   :  { %v326_v46 = vsel %vm170_vm5, %v321_v44, %v324_v43 }
 0x4d5   :  { %v327_v48 = vpack.c.bf16 %v326_v46, %v326_v46 }
 0x4d7   :  { %1172 = vmatmul.msk.bf16.vlgmr.msra.gmra.mxu3 %vm203_vm6, %v327_v48  ;;  %1173 = vmatmul.msk.bf16.vlgmr.msrb.gmra.mxu0 %vm203_vm6, %v327_v48 }
 0x4d8   :  { %833 = vmatpush.bf16.msrb.mxu0 %v1521_v35  ;;  %820 = vmatpush.bf16.msra.mxu3 %v1519_v31 }
 0x4dc   :  { %834 = vmatpush.bf16.msrb.mxu0 %v1528_v39  ;;  %821 = vmatpush.bf16.msra.mxu3 %v1524_v38 }
 0x4e0   :  { %835 = vmatpush.bf16.msrb.mxu0 %v1538_v47  ;;  %822 = vmatpush.bf16.msra.mxu3 %v1536_v45 }
 0x554   :  { %v353_v49 = vpop.f32.mrf.mxu0 }
 0x555   :  { %v357_v50 = vadd.f32 %v1568_v52, %v353_v49  ;;  %v522_v49 = vld [vmem:[#allocation2 + $0x6] sm:$0x3] }
 0x557   :  { %1246 = vtanh.f32 %v357_v50  ;;  %v1174_v59 = vmul.f32 -1.442695, %v357_v50 }
 0x55a   :  { %v340_v51 = vpop.f32.mrf.mxu3 }
 0x55b   :  { %v402_v54 = vadd.f32 %v401_v53, %v340_v51 }
 0x55c   :  { %v355_v55 = vpop.f32.mrf.mxu0 }
 0x55d   :  { %v1247_v56 = vpop.eup %1246  ;;  %1248 = vtanh.f32 %v402_v54  ;;  %v1175_v60 = vmul.f32 -1.442695, %v402_v54 }
 0x55e   :  { %380 = vrot.lane.b32.xlu0 %v1247_v56, %s1461_s13  ;;  %1250 = vpow2.f32 %v1174_v59 }
 0x55f   :  { %1252 = vpow2.f32 %v1175_v60 }
 0x562   :  { %v342_v57 = vpop.f32.mrf.mxu3 }
 0x563   :  { %v1249_v58 = vpop.eup %1248 }
 0x564   :  { %425 = vrot.lane.b32.xlu1 %v1249_v58, %s1454_s26  ;;  %v1251_v61 = vpop.eup %1250 }
 0x565   :  { %v361_v62 = vadd.f32 1.0, %v1251_v61  ;;  %v1253_v63 = vpop.eup %1252 }
 0x566   :  { %v406_v0 = vadd.f32 1.0, %v1253_v63 }
 0x567   :  { %1254 = vrcp.f32 %v361_v62  ;;  %v373_v9 = vand.u32 2147483648, %v361_v62  ;;  %vm367_vm0 = vweird.f32 %v361_v62  ;;  %v371_v10 = vand.u32 2147483647, %v361_v62 }
 0x568   :  { %1256 = vrcp.f32 %v406_v0  ;;  %v418_v17 = vand.u32 2147483648, %v406_v0  ;;  %vm412_vm4 = vweird.f32 %v406_v0  ;;  %v416_v19 = vand.u32 2147483647, %v406_v0 }
 0x569   :  { %v374_v13 = vor.u32 1.1754944e-38, %v373_v9  ;;  %vm372_vm2 = vcmp.eq.f32.partialorder %v371_v10, 8.507059e+37 }
 0x56a   :  { %v419_v21 = vor.u32 1.1754944e-38, %v418_v17  ;;  %vm417_vm8 = vcmp.eq.f32.partialorder %v416_v19, 8.507059e+37 }
 0x56d   :  { %v1255_v1 = vpop.eup %1254 }
 0x56e   :  { %v363_v2 = vmul.f32 %v1255_v1, %v361_v62  ;;  %v1257_v3 = vpop.eup %1256  ;;  %vm368_vm15 = vweird.f32 %v1255_v1 }
 0x56f   :  { %v408_v5 = vmul.f32 %v1257_v3, %v406_v0  ;;  %vm369_vm1 = vmor %vm367_vm0, %vm368_vm15  ;;  %vm413_vm3 = vweird.f32 %v1257_v3 }
 0x570   :  { %v364_v4 = vsub.f32 1.0, %v363_v2  ;;  %vm414_vm7 = vmor %vm412_vm4, %vm413_vm3 }
 0x571   :  { %v409_v7 = vsub.f32 1.0, %v408_v5 }
 0x572   :  { %v365_v6 = vmul.f32 %v1255_v1, %v364_v4 }
 0x573   :  { %v410_v11 = vmul.f32 %v1257_v3, %v409_v7 }
 0x574   :  { %v366_v8 = vadd.f32 %v1255_v1, %v365_v6 }
 0x575   :  { %v411_v14 = vadd.f32 %v1257_v3, %v410_v11 }
 0x576   :  { %v370_v12 = vsel %vm369_vm1, %v1255_v1, %v366_v8 }
 0x577   :  { %v375_v16 = vsel %vm372_vm2, %v374_v13, %v370_v12  ;;  %v415_v20 = vsel %vm414_vm7, %v1257_v3, %v411_v14 }
 0x578   :  { %v420_v23 = vsel %vm417_vm8, %v419_v21, %v415_v20  ;;  %v378_v25 = vmul.f32 %v375_v16, %v1575_v30 }
 0x579   :  { %v423_v32 = vmul.f32 %v420_v23, %v1579_v36 }
 0x5d0   :  { %v381_v15 = vpop.permute.xlu0 %380 }
 0x5d1   :  { %v383_v18 = vmul.f32 %v381_v15, %v375_v16 }
 0x5d3   :  { %385 = vrot.lane.b32.xlu2 %v383_v18, %s1462_s14 }
 0x5d6   :  { %v426_v22 = vpop.permute.xlu1 %425 }
 0x5d7   :  { %v428_v24 = vmul.f32 %v426_v22, %v420_v23 }
 0x5d9   :  { %430 = vrot.lane.b32.xlu0 %v428_v24, %s1460_s2 }
 0x62d   :  { %v386_v27 = vpop.permute.xlu2 %385 }
 0x62e   :  { %v1604_v28 = vadd.f32 %v386_v27, %v378_v25 }
 0x630   :  { %1258 = vtanh.f32 %v1604_v28 }
 0x636   :  { %v1259_v29 = vpop.eup %1258 }
 0x637   :  { %391 = vrot.lane.b32.xlu1 %v1259_v29, %s1460_s2 }
 0x64b   :  { %v431_v33 = vpop.permute.xlu0 %430 }
 0x64c   :  { %v1609_v34 = vadd.f32 %v431_v33, %v423_v32 }
 0x64e   :  { %1260 = vtanh.f32 %v1609_v34 }
 0x654   :  { %v1261_v37 = vpop.eup %1260 }
 0x655   :  { %436 = vrot.lane.b32.xlu2 %v1261_v37, %s1454_s26 }
 0x6a9   :  { %v392_v40 = vpop.permute.xlu1 %391 }
 0x6aa   :  { %v1613_v30 = vmul.f32 %v392_v40, %v375_v16 }
 0x6ac   :  { %444 = vrot.lane.b32.xlu1 %v1613_v30, %s1463_s15 }
 0x6af   :  { %v437_v42 = vpop.permute.xlu2 %436 }
 0x6b0   :  { %v439_v26 = vmul.f32 %v437_v42, %v420_v23 }
 0x6b2   :  { %441 = vrot.lane.b32.xlu0 %v439_v26, %s1460_s2 }
 0x71e   :  { %v445_v43 = vpop.permute.xlu1 %444 }
 0x724   :  { %v442_v36 = vpop.permute.xlu0 %441 }
 0x725   :  { %v447_v44 = vsel %vm170_vm5, %v442_v36, %v445_v43 }
 0x726   :  { %v448_v46 = vpack.c.bf16 %v447_v44, %v447_v44 }
 0x728   :  { %1176 = vmatmul.msk.bf16.vlgmr.msrb.gmra.mxu1 %vm203_vm6, %v448_v46  ;;  %1177 = vmatmul.msk.bf16.vlgmr.msrb.gmra.mxu2 %vm203_vm6, %v448_v46 }
 0x729   :  { %941 = vmatpush.bf16.msrb.mxu1 %v1519_v31  ;;  %954 = vmatpush.bf16.msrb.mxu2 %v1521_v35 }
 0x72d   :  { %942 = vmatpush.bf16.msrb.mxu1 %v1524_v38  ;;  %955 = vmatpush.bf16.msrb.mxu2 %v1528_v39 }
 0x731   :  { %943 = vmatpush.bf16.msrb.mxu1 %v1536_v45  ;;  %956 = vmatpush.bf16.msrb.mxu2 %v1538_v47 }
 0x7a5   :  { %v461_v48 = vpop.f32.mrf.mxu1 }
 0x7a6   :  { %v523_v50 = vadd.f32 %v522_v49, %v461_v48  ;;  %v643_v48 = vld [vmem:[#allocation2 + $0x8] sm:$0x3] }
 0x7a8   :  { %1262 = vtanh.f32 %v523_v50  ;;  %v1179_v58 = vmul.f32 -1.442695, %v523_v50 }
 0x7ab   :  { %v474_v51 = vpop.f32.mrf.mxu2 }
 0x7ac   :  { %v478_v53 = vadd.f32 %v1568_v52, %v474_v51 }
 0x7ad   :  { %v463_v54 = vpop.f32.mrf.mxu1 }
 0x7ae   :  { %v1263_v55 = vpop.eup %1262  ;;  %1264 = vtanh.f32 %v478_v53  ;;  %v1178_v56 = vmul.f32 -1.442695, %v478_v53 }
 0x7af   :  { %546 = vrot.lane.b32.xlu0 %v1263_v55, %s1454_s26 }
 0x7b0   :  { %1266 = vpow2.f32 %v1178_v56 }
 0x7b3   :  { %v476_v31 = vpop.f32.mrf.mxu2 }
 0x7b4   :  { %v1265_v38 = vpop.eup %1264 }
 0x7b5   :  { %501 = vrot.lane.b32.xlu2 %v1265_v38, %s1461_s13 }
 0x7b6   :  { %v1267_v45 = vpop.eup %1266 }
 0x7b7   :  { %v482_v57 = vadd.f32 1.0, %v1267_v45 }
 0x7b9   :  { %1268 = vrcp.f32 %v482_v57  ;;  %v494_v2 = vand.u32 2147483648, %v482_v57  ;;  %vm488_vm10 = vweird.f32 %v482_v57  ;;  %v492_v3 = vand.u32 2147483647, %v482_v57 }
 0x7ba   :  { %1270 = vpow2.f32 %v1179_v58 }
 0x7bb   :  { %v495_v6 = vor.u32 1.1754944e-38, %v494_v2  ;;  %vm493_vm12 = vcmp.eq.f32.partialorder %v492_v3, 8.507059e+37 }
 0x7bf   :  { %v1269_v59 = vpop.eup %1268 }
 0x7c0   :  { %v484_v60 = vmul.f32 %v1269_v59, %v482_v57  ;;  %v1271_v61 = vpop.eup %1270  ;;  %vm489_vm9 = vweird.f32 %v1269_v59 }
 0x7c1   :  { %v527_v63 = vadd.f32 1.0, %v1271_v61  ;;  %vm490_vm11 = vmor %vm488_vm10, %vm489_vm9 }
 0x7c2   :  { %v485_v62 = vsub.f32 1.0, %v484_v60 }
 0x7c3   :  { %1272 = vrcp.f32 %v527_v63  ;;  %v539_v14 = vand.u32 2147483648, %v527_v63  ;;  %vm533_vm14 = vweird.f32 %v527_v63  ;;  %v537_v15 = vand.u32 2147483647, %v527_v63 }
 0x7c4   :  { %v486_v0 = vmul.f32 %v1269_v59, %v485_v62 }
 0x7c5   :  { %v540_v17 = vor.u32 1.1754944e-38, %v539_v14  ;;  %vm538_vm0 = vcmp.eq.f32.partialorder %v537_v15, 8.507059e+37 }
 0x7c6   :  { %v487_v1 = vadd.f32 %v1269_v59, %v486_v0 }
 0x7c8   :  { %v491_v5 = vsel %vm490_vm11, %v1269_v59, %v487_v1 }
 0x7c9   :  { %v1273_v4 = vpop.eup %1272  ;;  %v496_v9 = vsel %vm493_vm12, %v495_v6, %v491_v5 }
 0x7ca   :  { %v529_v7 = vmul.f32 %v1273_v4, %v527_v63  ;;  %vm534_vm13 = vweird.f32 %v1273_v4  ;;  %v499_v24 = vmul.f32 %v496_v9, %v1604_v28 }
 0x7cb   :  { %vm535_vm15 = vmor %vm533_vm14, %vm534_vm13 }
 0x7cc   :  { %v530_v11 = vsub.f32 1.0, %v529_v7 }
 0x7ce   :  { %v531_v12 = vmul.f32 %v1273_v4, %v530_v11 }
 0x7d0   :  { %v532_v13 = vadd.f32 %v1273_v4, %v531_v12 }
 0x7d2   :  { %v536_v16 = vsel %vm535_vm15, %v1273_v4, %v532_v13 }
 0x7d3   :  { %v541_v19 = vsel %vm538_vm0, %v540_v17, %v536_v16 }
 0x7d4   :  { %v544_v21 = vmul.f32 %v541_v19, %v1609_v34 }
 0x80f   :  { %v502_v8 = vpop.permute.xlu2 %501 }
 0x810   :  { %v504_v10 = vmul.f32 %v502_v8, %v496_v9 }
 0x812   :  { %506 = vrot.lane.b32.xlu1 %v504_v10, %s1462_s14 }
 0x821   :  { %v547_v18 = vpop.permute.xlu0 %546 }
 0x822   :  { %v549_v20 = vmul.f32 %v547_v18, %v541_v19 }
 0x824   :  { %551 = vrot.lane.b32.xlu2 %v549_v20, %s1460_s2 }
 0x87e   :  { %v552_v22 = vpop.permute.xlu2 %551 }
 0x87f   :  { %v1633_v23 = vadd.f32 %v552_v22, %v544_v21 }
 0x881   :  { %1274 = vtanh.f32 %v1633_v23 }
 0x884   :  { %v507_v25 = vpop.permute.xlu1 %506 }
 0x885   :  { %v1637_v27 = vadd.f32 %v507_v25, %v499_v24 }
 0x887   :  { %v1275_v29 = vpop.eup %1274  ;;  %1276 = vtanh.f32 %v1637_v27 }
 0x888   :  { %557 = vrot.lane.b32.xlu1 %v1275_v29, %s1454_s26 }
 0x88d   :  { %v1277_v32 = vpop.eup %1276 }
 0x88e   :  { %512 = vrot.lane.b32.xlu0 %v1277_v32, %s1460_s2 }
 0x8fa   :  { %v558_v33 = vpop.permute.xlu1 %557 }
 0x8fb   :  { %v560_v34 = vmul.f32 %v558_v33, %v541_v19 }
 0x8fd   :  { %562 = vrot.lane.b32.xlu2 %v560_v34, %s1460_s2 }
 0x900   :  { %v513_v37 = vpop.permute.xlu0 %512 }
 0x901   :  { %v1643_v40 = vmul.f32 %v513_v37, %v496_v9 }
 0x903   :  { %565 = vrot.lane.b32.xlu0 %v1643_v40, %s1463_s15 }
 0x957   :  { %v563_v28 = vpop.permute.xlu2 %562 }
 0x975   :  { %v566_v42 = vpop.permute.xlu0 %565 }
 0x976   :  { %v568_v26 = vsel %vm170_vm5, %v563_v28, %v566_v42  ;;  %v764_v28 = vld [vmem:[#allocation2 + $0xa] sm:$0x3] }
 0x977   :  { %v569_v43 = vpack.c.bf16 %v568_v26, %v568_v26 }
 0x979   :  { %1180 = vmatmul.msk.bf16.vlgmr.msrb.gmra.mxu3 %vm203_vm6, %v569_v43  ;;  %1181 = vmatmul.msk.bf16.vlgmr.msra.gmra.mxu0 %vm203_vm6, %v569_v43 }
 0x97a   :  { %1062 = vmatpush.bf16.msrb.mxu3 %v1521_v35 }
 0x97e   :  { %1063 = vmatpush.bf16.msrb.mxu3 %v1528_v39 }
 0x982   :  { %1064 = vmatpush.bf16.msrb.mxu3 %v1538_v47 }
 0x9f6   :  { %v595_v36 = vpop.f32.mrf.mxu0 }
 0x9f7   :  { %v599_v44 = vadd.f32 %v1568_v52, %v595_v36 }
 0x9f9   :  { %1278 = vtanh.f32 %v599_v44  ;;  %v1182_v55 = vmul.f32 -1.442695, %v599_v44 }
 0x9fc   :  { %v582_v46 = vpop.f32.mrf.mxu3 }
 0x9fd   :  { %v644_v49 = vadd.f32 %v643_v48, %v582_v46 }
 0x9fe   :  { %v597_v50 = vpop.f32.mrf.mxu0 }
 0x9ff   :  { %v1279_v51 = vpop.eup %1278  ;;  %1280 = vtanh.f32 %v644_v49  ;;  %v1183_v35 = vmul.f32 -1.442695, %v644_v49 }
 0xa00   :  { %622 = vrot.lane.b32.xlu1 %v1279_v51, %s1461_s13 }
 0xa01   :  { %1282 = vpow2.f32 %v1183_v35 }
 0xa04   :  { %v584_v53 = vpop.f32.mrf.mxu3 }
 0xa05   :  { %v1281_v54 = vpop.eup %1280 }
 0xa06   :  { %667 = vrot.lane.b32.xlu2 %v1281_v54, %s1454_s26 }
 0xa07   :  { %v1283_v39 = vpop.eup %1282 }
 0xa08   :  { %v648_v47 = vadd.f32 1.0, %v1283_v39 }
 0xa0a   :  { %1284 = vrcp.f32 %v648_v47  ;;  %v660_v60 = vand.u32 2147483648, %v648_v47  ;;  %vm654_vm2 = vweird.f32 %v648_v47  ;;  %v658_v61 = vand.u32 2147483647, %v648_v47 }
 0xa0b   :  { %1286 = vpow2.f32 %v1182_v55 }
 0xa0c   :  { %v661_v0 = vor.u32 1.1754944e-38, %v660_v60  ;;  %vm659_vm4 = vcmp.eq.f32.partialorder %v658_v61, 8.507059e+37 }
 0xa10   :  { %v1285_v31 = vpop.eup %1284 }
 0xa11   :  { %v650_v38 = vmul.f32 %v1285_v31, %v648_v47  ;;  %v1287_v56 = vpop.eup %1286  ;;  %vm655_vm1 = vweird.f32 %v1285_v31 }
 0xa12   :  { %v603_v57 = vadd.f32 1.0, %v1287_v56  ;;  %vm656_vm3 = vmor %vm654_vm2, %vm655_vm1 }
 0xa13   :  { %v651_v45 = vsub.f32 1.0, %v650_v38 }
 0xa14   :  { %1288 = vrcp.f32 %v603_v57  ;;  %v615_v8 = vand.u32 2147483648, %v603_v57  ;;  %vm609_vm8 = vweird.f32 %v603_v57  ;;  %v613_v9 = vand.u32 2147483647, %v603_v57 }
 0xa15   :  { %v652_v58 = vmul.f32 %v1285_v31, %v651_v45 }
 0xa16   :  { %v616_v11 = vor.u32 1.1754944e-38, %v615_v8  ;;  %vm614_vm10 = vcmp.eq.f32.partialorder %v613_v9, 8.507059e+37 }
 0xa17   :  { %v653_v59 = vadd.f32 %v1285_v31, %v652_v58 }
 0xa19   :  { %v657_v63 = vsel %vm656_vm3, %v1285_v31, %v653_v59 }
 0xa1a   :  { %v1289_v62 = vpop.eup %1288  ;;  %v662_v3 = vsel %vm659_vm4, %v661_v0, %v657_v63 }
 0xa1b   :  { %v605_v1 = vmul.f32 %v1289_v62, %v603_v57  ;;  %vm610_vm7 = vweird.f32 %v1289_v62  ;;  %v665_v15 = vmul.f32 %v662_v3, %v1633_v23 }
 0xa1c   :  { %vm611_vm9 = vmor %vm609_vm8, %vm610_vm7 }
 0xa1d   :  { %v606_v5 = vsub.f32 1.0, %v605_v1 }
 0xa1f   :  { %v607_v6 = vmul.f32 %v1289_v62, %v606_v5 }
 0xa21   :  { %v608_v7 = vadd.f32 %v1289_v62, %v607_v6 }
 0xa23   :  { %v612_v10 = vsel %vm611_vm9, %v1289_v62, %v608_v7 }
 0xa24   :  { %v617_v13 = vsel %vm614_vm10, %v616_v11, %v612_v10 }
 0xa25   :  { %v620_v19 = vmul.f32 %v617_v13, %v1637_v27 }
 0xa60   :  { %v668_v2 = vpop.permute.xlu2 %667 }
 0xa61   :  { %v670_v4 = vmul.f32 %v668_v2, %v662_v3 }
 0xa63   :  { %672 = vrot.lane.b32.xlu1 %v670_v4, %s1460_s2 }
 0xa72   :  { %v623_v12 = vpop.permute.xlu1 %622 }
 0xa73   :  { %v625_v14 = vmul.f32 %v623_v12, %v617_v13 }
 0xa75   :  { %627 = vrot.lane.b32.xlu0 %v625_v14, %s1462_s14 }
 0xad5   :  { %v673_v16 = vpop.permute.xlu1 %672 }
 0xad6   :  { %v1659_v17 = vadd.f32 %v673_v16, %v665_v15 }
 0xad8   :  { %1290 = vtanh.f32 %v1659_v17 }
 0xade   :  { %v1291_v18 = vpop.eup %1290 }
 0xadf   :  { %678 = vrot.lane.b32.xlu0 %v1291_v18, %s1454_s26 }
 0xae7   :  { %v628_v20 = vpop.permute.xlu0 %627 }
 0xae8   :  { %v1664_v21 = vadd.f32 %v628_v20, %v620_v19 }
 0xaea   :  { %1292 = vtanh.f32 %v1664_v21 }
 0xaf0   :  { %v1293_v22 = vpop.eup %1292 }
 0xaf1   :  { %633 = vrot.lane.b32.xlu2 %v1293_v22, %s1460_s2 }
 0xb4b   :  { %v634_v24 = vpop.permute.xlu2 %633 }
 0xb4c   :  { %v1668_v23 = vmul.f32 %v634_v24, %v617_v13 }
 0xb4e   :  { %686 = vrot.lane.b32.xlu2 %v1668_v23, %s1463_s15 }
 0xb51   :  { %v679_v25 = vpop.permute.xlu0 %678 }
 0xb52   :  { %v681_v29 = vmul.f32 %v679_v25, %v662_v3 }
 0xb54   :  { %683 = vrot.lane.b32.xlu1 %v681_v29, %s1460_s2 }
 0xba8   :  { %v687_v32 = vpop.permute.xlu2 %686 }
 0xbc6   :  { %v684_v27 = vpop.permute.xlu1 %683 }
 0xbc7   :  { %v689_v33 = vsel %vm170_vm5, %v684_v27, %v687_v32 }
 0xbc8   :  { %v690_v34 = vpack.c.bf16 %v689_v33, %v689_v33 }
 0xbca   :  { %1184 = vmatmul.msk.bf16.vlgmr.msra.gmra.mxu1 %vm203_vm6, %v690_v34  ;;  %1185 = vmatmul.msk.bf16.vlgmr.msra.gmra.mxu2 %vm203_vm6, %v690_v34  ;;  %v885_v34 = vld [vmem:[#allocation2 + $0xc] sm:$0x3] }
 0xc47   :  { %v703_v37 = vpop.f32.mrf.mxu1 }
 0xc48   :  { %v765_v42 = vadd.f32 %v764_v28, %v703_v37 }
 0xc4a   :  { %1294 = vtanh.f32 %v765_v42  ;;  %v1187_v49 = vmul.f32 -1.442695, %v765_v42 }
 0xc4d   :  { %v716_v26 = vpop.f32.mrf.mxu2 }
 0xc4e   :  { %v720_v43 = vadd.f32 %v1568_v52, %v716_v26 }
 0xc4f   :  { %v705_v36 = vpop.f32.mrf.mxu1 }
 0xc50   :  { %v1295_v44 = vpop.eup %1294  ;;  %1296 = vtanh.f32 %v720_v43  ;;  %v1186_v50 = vmul.f32 -1.442695, %v720_v43 }
 0xc51   :  { %788 = vrot.lane.b32.xlu1 %v1295_v44, %s1454_s26  ;;  %1298 = vpow2.f32 %v1187_v49 }
 0xc52   :  { %1300 = vpow2.f32 %v1186_v50 }
 0xc55   :  { %v718_v46 = vpop.f32.mrf.mxu2 }
 0xc56   :  { %v1297_v48 = vpop.eup %1296 }
 0xc57   :  { %743 = vrot.lane.b32.xlu0 %v1297_v48, %s1461_s13  ;;  %v1299_v51 = vpop.eup %1298 }
 0xc58   :  { %v769_v53 = vadd.f32 1.0, %v1299_v51  ;;  %v1301_v54 = vpop.eup %1300 }
 0xc59   :  { %v724_v35 = vadd.f32 1.0, %v1301_v54 }
 0xc5a   :  { %1302 = vrcp.f32 %v769_v53  ;;  %v781_v58 = vand.u32 2147483648, %v769_v53  ;;  %vm775_vm12 = vweird.f32 %v769_v53  ;;  %v779_v59 = vand.u32 2147483647, %v769_v53 }
 0xc5b   :  { %1304 = vrcp.f32 %v724_v35  ;;  %v736_v2 = vand.u32 2147483648, %v724_v35  ;;  %vm730_vm0 = vweird.f32 %v724_v35  ;;  %v734_v4 = vand.u32 2147483647, %v724_v35 }
 0xc5c   :  { %v782_v62 = vor.u32 1.1754944e-38, %v781_v58  ;;  %vm780_vm14 = vcmp.eq.f32.partialorder %v779_v59, 8.507059e+37 }
 0xc5d   :  { %v737_v6 = vor.u32 1.1754944e-38, %v736_v2  ;;  %vm735_vm2 = vcmp.eq.f32.partialorder %v734_v4, 8.507059e+37 }
 0xc60   :  { %v1303_v39 = vpop.eup %1302 }
 0xc61   :  { %v771_v47 = vmul.f32 %v1303_v39, %v769_v53  ;;  %v1305_v55 = vpop.eup %1304  ;;  %vm776_vm11 = vweird.f32 %v1303_v39 }
 0xc62   :  { %v726_v38 = vmul.f32 %v1305_v55, %v724_v35  ;;  %vm777_vm13 = vmor %vm775_vm12, %vm776_vm11  ;;  %vm731_vm15 = vweird.f32 %v1305_v55 }
 0xc63   :  { %v772_v31 = vsub.f32 1.0, %v771_v47  ;;  %vm732_vm1 = vmor %vm730_vm0, %vm731_vm15 }
 0xc64   :  { %v727_v45 = vsub.f32 1.0, %v726_v38 }
 0xc65   :  { %v773_v56 = vmul.f32 %v1303_v39, %v772_v31 }
 0xc66   :  { %v728_v60 = vmul.f32 %v1305_v55, %v727_v45 }
 0xc67   :  { %v774_v57 = vadd.f32 %v1303_v39, %v773_v56 }
 0xc68   :  { %v729_v63 = vadd.f32 %v1305_v55, %v728_v60 }
 0xc69   :  { %v778_v61 = vsel %vm777_vm13, %v1303_v39, %v774_v57 }
 0xc6a   :  { %v783_v1 = vsel %vm780_vm14, %v782_v62, %v778_v61  ;;  %v733_v5 = vsel %vm732_vm1, %v1305_v55, %v729_v63 }
 0xc6b   :  { %v738_v8 = vsel %vm735_vm2, %v737_v6, %v733_v5  ;;  %v786_v14 = vmul.f32 %v783_v1, %v1659_v17 }
 0xc6c   :  { %v741_v10 = vmul.f32 %v738_v8, %v1664_v21 }
 0xcc3   :  { %v789_v0 = vpop.permute.xlu1 %788 }
 0xcc4   :  { %v791_v3 = vmul.f32 %v789_v0, %v783_v1 }
 0xcc6   :  { %793 = vrot.lane.b32.xlu0 %v791_v3, %s1460_s2 }
 0xcc9   :  { %v744_v7 = vpop.permute.xlu0 %743 }
 0xcca   :  { %v746_v9 = vmul.f32 %v744_v7, %v738_v8 }
 0xccc   :  { %748 = vrot.lane.b32.xlu2 %v746_v9, %s1462_s14 }
 0xd26   :  { %v749_v11 = vpop.permute.xlu2 %748 }
 0xd27   :  { %v1682_v12 = vadd.f32 %v749_v11, %v741_v10 }
 0xd29   :  { %1306 = vtanh.f32 %v1682_v12 }
 0xd2f   :  { %v1307_v13 = vpop.eup %1306 }
 0xd30   :  { %754 = vrot.lane.b32.xlu1 %v1307_v13, %s1460_s2 }
 0xd38   :  { %v794_v15 = vpop.permute.xlu0 %793 }
 0xd39   :  { %v1687_v16 = vadd.f32 %v794_v15, %v786_v14 }
 0xd3b   :  { %1308 = vtanh.f32 %v1687_v16 }
 0xd41   :  { %v1309_v18 = vpop.eup %1308 }
 0xd42   :  { %799 = vrot.lane.b32.xlu2 %v1309_v18, %s1454_s26 }
 0xd9c   :  { %v800_v19 = vpop.permute.xlu2 %799 }
 0xd9d   :  { %v802_v20 = vmul.f32 %v800_v19, %v783_v1 }
 0xd9f   :  { %804 = vrot.lane.b32.xlu0 %v802_v20, %s1460_s2 }
 0xda2   :  { %v755_v21 = vpop.permute.xlu1 %754 }
 0xda3   :  { %v1692_v22 = vmul.f32 %v755_v21, %v738_v8 }
 0xda5   :  { %807 = vrot.lane.b32.xlu1 %v1692_v22, %s1463_s15 }
 0xe11   :  { %v805_v24 = vpop.permute.xlu0 %804 }
 0xe17   :  { %v808_v17 = vpop.permute.xlu1 %807 }
 0xe18   :  { %v810_v25 = vsel %vm170_vm5, %v805_v24, %v808_v17 }
 0xe19   :  { %v811_v29 = vpack.c.bf16 %v810_v25, %v810_v25  ;;  %v1006_v25 = vld [vmem:[#allocation2 + $0xe] sm:$0x3] }
 0xe1b   :  { %1188 = vmatmul.msk.bf16.vlgmr.msra.gmra.mxu3 %vm203_vm6, %v811_v29  ;;  %1189 = vmatmul.msk.bf16.vlgmr.msrb.gmra.mxu0 %vm203_vm6, %v811_v29 }
 0xe98   :  { %v837_v32 = vpop.f32.mrf.mxu0 }
 0xe99   :  { %v841_v27 = vadd.f32 %v1568_v52, %v837_v32 }
 0xe9b   :  { %1310 = vtanh.f32 %v841_v27  ;;  %v1190_v36 = vmul.f32 -1.442695, %v841_v27 }
 0xe9e   :  { %v824_v33 = vpop.f32.mrf.mxu3 }
 0xe9f   :  { %v886_v37 = vadd.f32 %v885_v34, %v824_v33 }
 0xea0   :  { %v839_v28 = vpop.f32.mrf.mxu0 }
 0xea1   :  { %v1311_v42 = vpop.eup %1310  ;;  %1312 = vtanh.f32 %v886_v37  ;;  %v1191_v50 = vmul.f32 -1.442695, %v886_v37 }
 0xea2   :  { %864 = vrot.lane.b32.xlu2 %v1311_v42, %s1461_s13  ;;  %1314 = vpow2.f32 %v1190_v36 }
 0xea6   :  { %v826_v26 = vpop.f32.mrf.mxu3 }
 0xea7   :  { %v1313_v43 = vpop.eup %1312 }
 0xea8   :  { %909 = vrot.lane.b32.xlu0 %v1313_v43, %s1454_s26  ;;  %v1315_v44 = vpop.eup %1314 }
 0xea9   :  { %v845_v46 = vadd.f32 1.0, %v1315_v44 }
 0xeab   :  { %1316 = vrcp.f32 %v845_v46  ;;  %v857_v35 = vand.u32 2147483648, %v845_v46  ;;  %vm851_vm4 = vweird.f32 %v845_v46  ;;  %v855_v47 = vand.u32 2147483647, %v845_v46 }
 0xeac   :  { %1318 = vpow2.f32 %v1191_v50 }
 0xead   :  { %v858_v38 = vor.u32 1.1754944e-38, %v857_v35  ;;  %vm856_vm8 = vcmp.eq.f32.partialorder %v855_v47, 8.507059e+37 }
 0xeb1   :  { %v1317_v48 = vpop.eup %1316 }
 0xeb2   :  { %v847_v49 = vmul.f32 %v1317_v48, %v845_v46  ;;  %vm852_vm3 = vweird.f32 %v1317_v48  ;;  %v1319_v39 = vpop.eup %1318 }
 0xeb3   :  { %vm853_vm7 = vmor %vm851_vm4, %vm852_vm3  ;;  %v890_v31 = vadd.f32 1.0, %v1319_v39 }
 0xeb4   :  { %v848_v51 = vsub.f32 1.0, %v847_v49 }
 0xeb5   :  { %1320 = vrcp.f32 %v890_v31  ;;  %v902_v63 = vand.u32 2147483648, %v890_v31  ;;  %vm896_vm10 = vweird.f32 %v890_v31  ;;  %v900_v0 = vand.u32 2147483647, %v890_v31 }
 0xeb6   :  { %v849_v53 = vmul.f32 %v1317_v48, %v848_v51 }
 0xeb7   :  { %v903_v2 = vor.u32 1.1754944e-38, %v902_v63  ;;  %vm901_vm12 = vcmp.eq.f32.partialorder %v900_v0, 8.507059e+37 }
 0xeb8   :  { %v850_v54 = vadd.f32 %v1317_v48, %v849_v53 }
 0xeba   :  { %v854_v55 = vsel %vm853_vm7, %v1317_v48, %v850_v54 }
 0xebb   :  { %v859_v45 = vsel %vm856_vm8, %v858_v38, %v854_v55  ;;  %v1321_v58 = vpop.eup %1320 }
 0xebc   :  { %v892_v59 = vmul.f32 %v1321_v58, %v890_v31  ;;  %vm897_vm9 = vweird.f32 %v1321_v58  ;;  %v862_v6 = vmul.f32 %v859_v45, %v1682_v12 }
 0xebd   :  { %vm898_vm11 = vmor %vm896_vm10, %vm897_vm9  ;;  %vm278_vm9 = vcmask 123904  }
 0xebe   :  { %v893_v60 = vsub.f32 1.0, %v892_v59 }
 0xec0   :  { %v894_v61 = vmul.f32 %v1321_v58, %v893_v60 }
 0xec2   :  { %v895_v62 = vadd.f32 %v1321_v58, %v894_v61 }
 0xec4   :  { %v899_v1 = vsel %vm898_vm11, %v1321_v58, %v895_v62 }
 0xec5   :  { %v904_v4 = vsel %vm901_vm12, %v903_v2, %v899_v1 }
 0xec6   :  { %v907_v9 = vmul.f32 %v904_v4, %v1687_v16 }
 0xefc   :  { %v865_v56 = vpop.permute.xlu2 %864 }
 0xefd   :  { %v867_v57 = vmul.f32 %v865_v56, %v859_v45 }
 0xeff   :  { %869 = vrot.lane.b32.xlu1 %v867_v57, %s1462_s14 }
 0xf1a   :  { %v910_v3 = vpop.permute.xlu0 %909 }
 0xf1b   :  { %v912_v5 = vmul.f32 %v910_v3, %v904_v4 }
 0xf1d   :  { %914 = vrot.lane.b32.xlu2 %v912_v5, %s1460_s2 }
 0xf71   :  { %v870_v7 = vpop.permute.xlu1 %869 }
 0xf72   :  { %v1705_v8 = vadd.f32 %v870_v7, %v862_v6 }
 0xf74   :  { %1322 = vtanh.f32 %v1705_v8 }
 0xf77   :  { %v915_v10 = vpop.permute.xlu2 %914 }
 0xf78   :  { %v1709_v11 = vadd.f32 %v915_v10, %v907_v9 }
 0xf7a   :  { %v1323_v13 = vpop.eup %1322  ;;  %1324 = vtanh.f32 %v1709_v11 }
 0xf7b   :  { %875 = vrot.lane.b32.xlu0 %v1323_v13, %s1460_s2 }
 0xf80   :  { %v1325_v14 = vpop.eup %1324 }
 0xf81   :  { %920 = vrot.lane.b32.xlu1 %v1325_v14, %s1454_s26 }
 0xfed   :  { %v876_v15 = vpop.permute.xlu0 %875 }
 0xfee   :  { %v1714_v12 = vmul.f32 %v876_v15, %v859_v45 }
 0xff0   :  { %928 = vrot.lane.b32.xlu0 %v1714_v12, %s1463_s15 }
 0xff3   :  { %v921_v18 = vpop.permute.xlu1 %920 }
 0xff4   :  { %v923_v19 = vmul.f32 %v921_v18, %v904_v4 }
 0xff6   :  { %925 = vrot.lane.b32.xlu2 %v923_v19, %s1460_s2 }
0x1050   :  { %v926_v16 = vpop.permute.xlu2 %925 }
0x1062   :  { %v929_v20 = vpop.permute.xlu0 %928 }
0x1063   :  { %v931_v21 = vsel %vm170_vm5, %v926_v16, %v929_v20 }
0x1064   :  { %v932_v24 = vpack.c.bf16 %v931_v21, %v931_v21  ;;  %v1350_v21 = vld [vmem:[%s1772_s4] ss:$0 sm:$0xff] }
0x1066   :  { %1192 = vmatmul.msk.bf16.vlgmr.msrb.gmra.mxu1 %vm203_vm6, %v932_v24  ;;  %1193 = vmatmul.msk.bf16.vlgmr.msrb.gmra.mxu2 %vm203_vm6, %v932_v24 }
0x10e3   :  { %v945_v17 = vpop.f32.mrf.mxu1 }
0x10e4   :  { %v1007_v29 = vadd.f32 %v1006_v25, %v945_v17 }
0x10e6   :  { %1326 = vtanh.f32 %v1007_v29  ;;  %v1195_v42 = vmul.f32 -1.442695, %v1007_v29 }
0x10e9   :  { %v958_v32 = vpop.f32.mrf.mxu2 }
0x10ea   :  { %v962_v27 = vadd.f32 %v1568_v52, %v958_v32 }
0x10eb   :  { %v947_v33 = vpop.f32.mrf.mxu1 }
0x10ec   :  { %v1327_v34 = vpop.eup %1326  ;;  %1328 = vtanh.f32 %v962_v27  ;;  %v1194_v46 = vmul.f32 -1.442695, %v962_v27 }
0x10ed   :  { %1030 = vrot.lane.b32.xlu2 %v1327_v34, %s1454_s26  ;;  %1330 = vpow2.f32 %v1195_v42 }
0x10f1   :  { %v960_v37 = vpop.f32.mrf.mxu2 }
0x10f2   :  { %v1329_v28 = vpop.eup %1328 }
0x10f3   :  { %985 = vrot.lane.b32.xlu1 %v1329_v28, %s1461_s13  ;;  %v1331_v26 = vpop.eup %1330 }
0x10f4   :  { %v1011_v43 = vadd.f32 1.0, %v1331_v26 }
0x10f6   :  { %1332 = vrcp.f32 %v1011_v43  ;;  %v1023_v50 = vand.u32 2147483648, %v1011_v43  ;;  %vm1017_vm14 = vweird.f32 %v1011_v43  ;;  %v1021_v53 = vand.u32 2147483647, %v1011_v43 }
0x10f7   :  { %1334 = vpow2.f32 %v1194_v46 }
0x10f8   :  { %v1024_v39 = vor.u32 1.1754944e-38, %v1023_v50  ;;  %vm1022_vm0 = vcmp.eq.f32.partialorder %v1021_v53, 8.507059e+37 }
0x10fc   :  { %v1333_v36 = vpop.eup %1332 }
0x10fd   :  { %v1013_v44 = vmul.f32 %v1333_v36, %v1011_v43  ;;  %vm1018_vm13 = vweird.f32 %v1333_v36  ;;  %v1335_v51 = vpop.eup %1334 }
0x10fe   :  { %vm1019_vm15 = vmor %vm1017_vm14, %vm1018_vm13  ;;  %v966_v35 = vadd.f32 1.0, %v1335_v51 }
0x10ff   :  { %v1014_v48 = vsub.f32 1.0, %v1013_v44 }
0x1100   :  { %1336 = vrcp.f32 %v966_v35  ;;  %v978_v59 = vand.u32 2147483648, %v966_v35  ;;  %vm972_vm2 = vweird.f32 %v966_v35  ;;  %v976_v60 = vand.u32 2147483647, %v966_v35 }
0x1101   :  { %v1015_v52 = vmul.f32 %v1333_v36, %v1014_v48 }
0x1102   :  { %v979_v62 = vor.u32 1.1754944e-38, %v978_v59  ;;  %vm977_vm4 = vcmp.eq.f32.partialorder %v976_v60, 8.507059e+37 }
0x1103   :  { %v1016_v49 = vadd.f32 %v1333_v36, %v1015_v52 }
0x1105   :  { %v1020_v54 = vsel %vm1019_vm15, %v1333_v36, %v1016_v49 }
0x1106   :  { %v1025_v55 = vsel %vm1022_vm0, %v1024_v39, %v1020_v54  ;;  %v1337_v38 = vpop.eup %1336 }
0x1107   :  { %v968_v56 = vmul.f32 %v1337_v38, %v966_v35  ;;  %vm973_vm1 = vweird.f32 %v1337_v38  ;;  %v1028_v2 = vmul.f32 %v1025_v55, %v1709_v11 }
0x1108   :  { %vm974_vm3 = vmor %vm972_vm2, %vm973_vm1 }
0x1109   :  { %v969_v45 = vsub.f32 1.0, %v968_v56 }
0x110b   :  { %v970_v57 = vmul.f32 %v1337_v38, %v969_v45 }
0x110d   :  { %v971_v58 = vadd.f32 %v1337_v38, %v970_v57 }
0x110f   :  { %v975_v61 = vsel %vm974_vm3, %v1337_v38, %v971_v58 }
0x1110   :  { %v980_v0 = vsel %vm977_vm4, %v979_v62, %v975_v61 }
0x1111   :  { %v983_v6 = vmul.f32 %v980_v0, %v1705_v8 }
0x1147   :  { %v1031_v47 = vpop.permute.xlu2 %1030 }
0x1148   :  { %v1033_v31 = vmul.f32 %v1031_v47, %v1025_v55 }
0x114a   :  { %1035 = vrot.lane.b32.xlu1 %v1033_v31, %s1460_s2 }
0x1165   :  { %v986_v63 = vpop.permute.xlu1 %985 }
0x1166   :  { %v988_v1 = vmul.f32 %v986_v63, %v980_v0 }
0x1168   :  { %990 = vrot.lane.b32.xlu0 %v988_v1, %s1462_s14 }
0x11bc   :  { %v1036_v3 = vpop.permute.xlu1 %1035 }
0x11bd   :  { %v1038_v4 = vadd.f32 %v1036_v3, %v1028_v2 }
0x11bf   :  { %1338 = vtanh.f32 %v1038_v4 }
0x11c5   :  { %v1339_v5 = vpop.eup %1338 }
0x11c6   :  { %1041 = vrot.lane.b32.xlu0 %v1339_v5, %s1454_s26 }
0x11da   :  { %v991_v7 = vpop.permute.xlu0 %990 }
0x11db   :  { %v993_v9 = vadd.f32 %v991_v7, %v983_v6 }
0x11dd   :  { %1340 = vtanh.f32 %v993_v9 }
0x11e3   :  { %v1341_v10 = vpop.eup %1340 }
0x11e4   :  { %996 = vrot.lane.b32.xlu2 %v1341_v10, %s1460_s2 }
0x1238   :  { %v1042_v13 = vpop.permute.xlu0 %1041 }
0x1239   :  { %v1044_v14 = vmul.f32 %v1042_v13, %v1025_v55 }
0x123b   :  { %1046 = vrot.lane.b32.xlu1 %v1044_v14, %s1460_s2 }
0x123e   :  { %v997_v15 = vpop.permute.xlu2 %996 }
0x123f   :  { %v999_v11 = vmul.f32 %v997_v15, %v980_v0 }
0x1241   :  { %1049 = vrot.lane.b32.xlu2 %v999_v11, %s1463_s15 }
0x129b   :  { %v1050_v18 = vpop.permute.xlu2 %1049 }
0x12ad   :  { %v1047_v19 = vpop.permute.xlu1 %1046 }
0x12ae   :  { %v1052_v16 = vsel %vm170_vm5, %v1047_v19, %v1050_v18 }
0x12af   :  { %v1053_v20 = vpack.c.bf16 %v1052_v16, %v1052_v16 }
0x12b1   :  { %1196 = vmatmul.msk.bf16.vlgmr.msrb.gmra.mxu3 %vm203_vm6, %v1053_v20 }
0x1334   :  { %v1066_v8 = vpop.f32.mrf.mxu3 }
0x1335   :  { %v1070_v24 = vadd.f32 %v1350_v21, %v1066_v8 }
0x1337   :  { %1342 = vtanh.f32 %v1070_v24  ;;  %v1197_v29 = vmul.f32 -1.442695, %v1070_v24 }
0x1339   :  { %1344 = vpow2.f32 %v1197_v29 }
0x133c   :  { %v1068_v17 = vpop.f32.mrf.mxu3 }
0x133d   :  { %v1343_v25 = vpop.eup %1342 }
0x133e   :  { %1093 = vrot.lane.b32.xlu0 %v1343_v25, %s1461_s13 }
0x133f   :  { %v1345_v32 = vpop.eup %1344 }
0x1340   :  { %v1074_v27 = vadd.f32 1.0, %v1345_v32 }
0x1342   :  { %1346 = vrcp.f32 %v1074_v27  ;;  %v1086_v26 = vand.u32 2147483648, %v1074_v27  ;;  %vm1080_vm6 = vweird.f32 %v1074_v27  ;;  %v1084_v43 = vand.u32 2147483647, %v1074_v27 }
0x1344   :  { %v1087_v36 = vor.u32 1.1754944e-38, %v1086_v26  ;;  %vm1085_vm8 = vcmp.eq.f32.partialorder %v1084_v43, 8.507059e+37 }
0x1346   :  { %275 = vrot.lane.b32.xlu0 %v1584_v41, %s1464_s18 }
0x1348   :  { %v1347_v33 = vpop.eup %1346 }
0x1349   :  { %v1076_v34 = vmul.f32 %v1347_v33, %v1074_v27  ;;  %vm1081_vm5 = vweird.f32 %v1347_v33 }
0x134a   :  { %vm1082_vm7 = vmor %vm1080_vm6, %vm1081_vm5 }
0x134b   :  { %v1077_v37 = vsub.f32 1.0, %v1076_v34 }
0x134d   :  { %v1078_v28 = vmul.f32 %v1347_v33, %v1077_v37 }
0x134e   :  { %638 = vrot.lane.b32.xlu0 %v1668_v23, %s1464_s18 }
0x134f   :  { %v1079_v42 = vadd.f32 %v1347_v33, %v1078_v28 }
0x1351   :  { %v1083_v41 = vsel %vm1082_vm7, %v1347_v33, %v1079_v42 }
0x1352   :  { %v1088_v44 = vsel %vm1085_vm8, %v1087_v36, %v1083_v41 }
0x1353   :  { %v1091_v50 = vmul.f32 %v1088_v44, %v993_v9 }
0x1356   :  { %1001 = vrot.lane.b32.xlu0 %v999_v11, %s1464_s18 }
0x13b0   :  { %v1094_v23 = vpop.permute.xlu0 %1093 }
0x13b1   :  { %v1096_v46 = vmul.f32 %v1094_v23, %v1088_v44 }
0x13b3   :  { %1098 = vrot.lane.b32.xlu1 %v1096_v46, %s1462_s14 }
0x13b8   :  { %v276_v48 = vpop.permute.xlu0 %275 }
0x13b9   :  { %279 = vst.msk [vmem:[#allocation13] sm:$0x3] %vm278_vm9, %v276_v48 }
0x13bb   :  { %396 = vrot.lane.b32.xlu1 %v1613_v30, %s1464_s18 }
0x13c0   :  { %v639_v52 = vpop.permute.xlu0 %638 }
0x13c1   :  { %642 = vst.msk [vmem:[#allocation13 + $0x6] sm:$0x3] %vm278_vm9, %v639_v52 }
0x13c3   :  { %759 = vrot.lane.b32.xlu1 %v1692_v22, %s1464_s18 }
0x13c8   :  { %v1002_v49 = vpop.permute.xlu0 %1001 }
0x13c9   :  { %1005 = vst.msk [vmem:[#allocation13 + $0xc] sm:$0x3] %vm278_vm9, %v1002_v49 }
0x1425   :  { %v1099_v51 = vpop.permute.xlu1 %1098 }
0x1426   :  { %v1101_v53 = vadd.f32 %v1099_v51, %v1091_v50 }
0x1428   :  { %1348 = vtanh.f32 %v1101_v53 }
0x142d   :  { %v397_v54 = vpop.permute.xlu1 %396 }
0x142e   :  { %v1349_v35 = vpop.eup %1348  ;;  %400 = vst.msk [vmem:[#allocation13 + $0x2] sm:$0x3] %vm278_vm9, %v397_v54 }
0x142f   :  { %1104 = vrot.lane.b32.xlu2 %v1349_v35, %s1460_s2 }
0x1435   :  { %v760_v30 = vpop.permute.xlu1 %759 }
0x1436   :  { %763 = vst.msk [vmem:[#allocation13 + $0x8] sm:$0x3] %vm278_vm9, %v760_v30 }
0x1437   :  { %517 = vrot.lane.b32.xlu2 %v1643_v40, %s1464_s18 }
0x143f   :  { %880 = vrot.lane.b32.xlu2 %v1714_v12, %s1464_s18 }
0x1489   :  { %v1105_v22 = vpop.permute.xlu2 %1104 }
0x148a   :  { %v1107_v39 = vmul.f32 %v1105_v22, %v1088_v44 }
0x148c   :  { %1109 = vrot.lane.b32.xlu1 %v1107_v39, %s1464_s18 }
0x1491   :  { %v518_v47 = vpop.permute.xlu2 %517 }
0x1492   :  { %521 = vst.msk [vmem:[#allocation13 + $0x4] sm:$0x3] %vm278_vm9, %v518_v47 }
0x1499   :  { %v881_v55 = vpop.permute.xlu2 %880 }
0x149a   :  { %884 = vst.msk [vmem:[#allocation13 + $0xa] sm:$0x3] %vm278_vm9, %v881_v55 }
0x14fe   :  { %v1110_v40 = vpop.permute.xlu1 %1109 }
0x14ff   :  { %1113 = vst.msk [vmem:[#allocation13 + $0xe] sm:$0x3] %vm278_vm9, %v1110_v40 }
0x1500   :  { %1126 = dma.vmem_to_hbm [thread:$0]  %s1119_s22, 256, %s1121_s20, [#allocation9], %s1460_s2, %s1460_s2, %s1466_s23  }
0x1501   :  { %1451 = dma.done.wait [#allocation9], 256  }
0x1502   :  { %1452 = vsyncadd [#allocation9], 4294967040 }
0x1503   :  { %1131 = vsyncpa [#allocation8], 1 }
0x1504   :  { %1132 = vsyncpa [#allocation11], 1 }
0x1505   :  { %1133 = vsyncpa [#allocation9], 1 }

</bundles_post_ra>
